<compile_context>
chip_gen: v7x
topology: tpu7x:2x2x1
jax: 0.10.0
libtpu: 0.0.40
codegen_flags: <defaults>
</compile_context>

<pallas_src>
import functools

import jax
import jax.numpy as jnp
from jax.experimental import pallas as pl
from jax.experimental.pallas import tpu as pltpu


# ----------------------------------------------------------------- kernel ---
def _layernorm(x, gamma, beta, eps):
    mu = jnp.mean(x, axis=-1, keepdims=True)
    xc = x - mu
    var = jnp.mean(xc * xc, axis=-1, keepdims=True)
    return xc * jax.lax.rsqrt(var + eps) * gamma + beta


def _transformer_block_kernel(x_ref, wqkv_ref, bqkv_ref, ahead_ref,
                              wo_ref, bo_ref, ln1g_ref, ln1b_ref,
                              w1_ref, b1_ref, w2_ref, b2_ref,
                              ln2g_ref, ln2b_ref, o_ref, *, heads, eps):
    b = x_ref.shape[0]           # attention sequence length (= image batch)
    c = x_ref.shape[2]           # embedding dim
    dh = c // heads
    scale = 1.0 / (float(dh) ** 0.5)

    wqkv = wqkv_ref[...]
    bqkv = bqkv_ref[...]
    ahead = ahead_ref[...]
    wo = wo_ref[...]
    bo = bo_ref[...]

    # ---- packed QKV projection (lane-dense: 3c output columns) ------------
    xs, qs, ks, vs = [], [], [], []
    for i in range(b):
        xi = x_ref[i].astype(jnp.float32)                       # (T, c)
        qkv = jnp.dot(xi, wqkv, preferred_element_type=jnp.float32) + bqkv
        xs.append(xi)
        qs.append(qkv[:, 0 * c:1 * c] * scale)
        ks.append(qkv[:, 1 * c:2 * c])
        vs.append(qkv[:, 2 * c:3 * c])

    outs = []
    for i in range(b):
        # per-head scores broadcast across each head's dh lanes via the
        # block-diagonal head-sum matrix A:
        #   s_ij[t, l] = sum_{m in head(l)} q_i[t, m] * k_j[t, m]
        s = [jnp.dot(qs[i] * ks[j], ahead, preferred_element_type=jnp.float32)
             for j in range(b)]
        m = s[0]
        for j in range(1, b):
            m = jnp.maximum(m, s[j])
        e = [jnp.exp(sj - m) for sj in s]                       # softmax (VPU/EUP)
        denom = e[0]
        for j in range(1, b):
            denom = denom + e[j]
        attn = e[0] * vs[0]
        for j in range(1, b):
            attn = attn + e[j] * vs[j]
        attn = attn / denom                                     # (T, c)
        attn = jnp.dot(attn, wo, preferred_element_type=jnp.float32) + bo

        # residual + LayerNorm1   (dropout1 = identity, eval mode)
        h1 = _layernorm(xs[i] + attn, ln1g_ref[...], ln1b_ref[...], eps)

        # feed-forward: (T, c) @ (c, 4c) -> ReLU -> (T, 4c) @ (4c, c)
        f = jnp.dot(h1, w1_ref[...], preferred_element_type=jnp.float32) + b1_ref[...]
        f = jnp.maximum(f, 0.0)
        f = jnp.dot(f, w2_ref[...], preferred_element_type=jnp.float32) + b2_ref[...]

        # residual + LayerNorm2   (dropout2 = identity, eval mode)
        h2 = _layernorm(h1 + f, ln2g_ref[...], ln2b_ref[...], eps)
        outs.append(h2)

    # pack the b token streams along lanes -> (T, b*c) = 128-lane dense store
    o_ref[...] = jnp.concatenate(outs, axis=-1).astype(o_ref.dtype)


# ---------------------------------------------------------------- wrapper ---
def transformer_block_forward(x_nchw, params, *, heads=8, seq_tile=32, eps=1e-5):
    b, c, h, w = x_nchw.shape
    hp, wp = h // 2, w // 2
    S = hp * wp
    dh = c // heads

    # --- layout glue (pure data movement, no FLOPs) -------------------------
    # adaptive_avg_pool2d(x, (h//2, w//2)) == exact 2x2 mean for even h, w
    pooled = x_nchw.reshape(b, c, hp, 2, wp, 2).mean(axis=(3, 5))
    tokens = pooled.reshape(b, c, S).transpose(0, 2, 1)         # (L=b, N=S, E=c)

    T = min(seq_tile, S)
    assert S % T == 0, "number of pooled positions must be divisible by tile"
    grid = (S // T,)

    # block-diagonal head-sum matrix (constant, computed once)
    lane = jnp.arange(c)
    a_head = (lane[:, None] // dh == lane[None, :] // dh).astype(jnp.float32)

    def rep(shape):  # replicated (weight) block
        return pl.BlockSpec(shape, lambda s: (0, 0))

    out_packed = pl.pallas_call(
        functools.partial(_transformer_block_kernel, heads=heads, eps=eps),
        out_shape=jax.ShapeDtypeStruct((S, b * c), x_nchw.dtype),
        grid=grid,
        in_specs=[
            pl.BlockSpec((b, T, c), lambda s: (0, s, 0)),       # tokens
            rep((c, 3 * c)), rep((1, 3 * c)),                   # Wqkv, bqkv
            rep((c, c)),                                        # head-sum matrix
            rep((c, c)), rep((1, c)),                           # Wo, bo
            rep((1, c)), rep((1, c)),                           # ln1 gamma / beta
            rep((c, 4 * c)), rep((1, 4 * c)),                   # W1, b1
            rep((4 * c, c)), rep((1, c)),                       # W2, b2
            rep((1, c)), rep((1, c)),                           # ln2 gamma / beta
        ],
        out_specs=pl.BlockSpec((T, b * c), lambda s: (s, 0)),   # lane-dense out
        compiler_params=pltpu.CompilerParams(
            dimension_semantics=("parallel",)),
    )(tokens, params["wqkv"], params["bqkv"], a_head,
      params["wo"], params["bo"], params["ln1_g"], params["ln1_b"],
      params["w1"], params["b1"], params["w2"], params["b2"],
      params["ln2_g"], params["ln2_b"])

    # --- layout glue: unpack, back to NCHW, nearest 2x upsample -------------
    y = out_packed.reshape(S, b, c).transpose(1, 2, 0)          # (b, c, S)
    y = y.reshape(b, c, hp, wp)
    y = jnp.repeat(jnp.repeat(y, 2, axis=2), 2, axis=3)
    return y


# ------------------------------------------------------ pure-JAX reference ---
_HI = jax.lax.Precision.HIGHEST


def _mha_ref(t, p, heads):
    # t: (L, N, E) -- PyTorch batch_first=False convention
    L, N, E = t.shape
    dh = E // heads
    qkv = jnp.dot(t, p["wqkv"], precision=_HI) + p["bqkv"]
    q, k, v = jnp.split(qkv, 3, axis=-1)
    q = q.reshape(L, N, heads, dh)
    k = k.reshape(L, N, heads, dh)
    v = v.reshape(L, N, heads, dh)
    scores = jnp.einsum("lnhd,mnhd->nhlm", q, k, precision=_HI) / (dh ** 0.5)
    a = jax.nn.softmax(scores, axis=-1)
    o = jnp.einsum("nhlm,mnhd->lnhd", a, v, precision=_HI).reshape(L, N, E)
    return jnp.dot(o, p["wo"], precision=_HI) + p["bo"]


def _ln_ref(x, g, b_, eps=1e-5):
    mu = jnp.mean(x, axis=-1, keepdims=True)
    var = jnp.mean((x - mu) ** 2, axis=-1, keepdims=True)
    return (x - mu) / jnp.sqrt(var + eps) * g + b_


def transformer_block_ref(x_nchw, p, heads=8):
    b, c, h, w = x_nchw.shape
    hp, wp = h // 2, w // 2
    xp = x_nchw.reshape(b, c, hp, 2, wp, 2).mean(axis=(3, 5))   # adaptive avg pool
    t = xp.reshape(b, c, -1).transpose(0, 2, 1)                 # (b, S, c), seq axis = 0
    t = t + _mha_ref(t, p, heads)                               # dropout1: identity (eval)
    t = _ln_ref(t, p["ln1_g"], p["ln1_b"])
    ff = jnp.maximum(jnp.dot(t, p["w1"], precision=_HI) + p["b1"], 0.0)
    ff = jnp.dot(ff, p["w2"], precision=_HI) + p["b2"]
    t = t + ff                                                  # dropout2: identity (eval)
    t = _ln_ref(t, p["ln2_g"], p["ln2_b"])
    y = t.transpose(0, 2, 1).reshape(b, c, hp, wp)
    return jnp.repeat(jnp.repeat(y, 2, axis=2), 2, axis=3)      # nearest x2


# ------------------------------------------------------------------ params ---
def init_params(key, dim):
    keys = jax.random.split(key, 12)

    def rnd(k, shape, scale=0.1):
        return (scale * jax.random.normal(k, shape)).astype(jnp.float32)

    return dict(
        wqkv=rnd(keys[0], (dim, 3 * dim)), bqkv=rnd(keys[1], (1, 3 * dim)),
        wo=rnd(keys[2], (dim, dim)),       bo=rnd(keys[3], (1, dim)),
        w1=rnd(keys[4], (dim, 4 * dim)),   b1=rnd(keys[5], (1, 4 * dim)),
        w2=rnd(keys[6], (4 * dim, dim)),   b2=rnd(keys[7], (1, dim)),
        ln1_g=1.0 + rnd(keys[8], (1, dim)),  ln1_b=rnd(keys[9], (1, dim)),
        ln2_g=1.0 + rnd(keys[10], (1, dim)), ln2_b=rnd(keys[11], (1, dim)),
    )


# -------------------------------------------------------------------- main ---
if __name__ == "__main__":
    key = jax.random.PRNGKey(0)
    kx, kp = jax.random.split(key)

    B, C, H, W = 2, 64, 16, 16        # TransformerBlock(dim=64), heads=8 (dim % heads == 0)
    HEADS = 8

    x = jax.random.normal(kx, (B, C, H, W), dtype=jnp.float32)
    params = init_params(kp, C)

    run = jax.jit(lambda xx, pp: transformer_block_forward(
        xx, pp, heads=HEADS, seq_tile=32))
    out = jax.block_until_ready(run(x, params))

    ref = transformer_block_ref(x, params, heads=HEADS)
    err = float(jnp.max(jnp.abs(out - ref)))
    assert out.shape == (B, C, H, W), out.shape
    assert err < 2e-3, f"mismatch vs reference: max abs err {err}"

    print("KERNEL_OK")
</pallas_src>

<mosaic_0001>
module attributes {stable_mosaic.version = 11 : i64} {
  func.func @_transformer_block_kernel(%arg0: i32, %arg1: memref<2x32x64xf32, #tpu.memory_space<vmem>>, %arg2: memref<64x192xf32, #tpu.memory_space<vmem>>, %arg3: memref<1x192xf32, #tpu.memory_space<vmem>>, %arg4: memref<64x64xf32, #tpu.memory_space<vmem>>, %arg5: memref<64x64xf32, #tpu.memory_space<vmem>>, %arg6: memref<1x64xf32, #tpu.memory_space<vmem>>, %arg7: memref<1x64xf32, #tpu.memory_space<vmem>>, %arg8: memref<1x64xf32, #tpu.memory_space<vmem>>, %arg9: memref<64x256xf32, #tpu.memory_space<vmem>>, %arg10: memref<1x256xf32, #tpu.memory_space<vmem>>, %arg11: memref<256x64xf32, #tpu.memory_space<vmem>>, %arg12: memref<1x64xf32, #tpu.memory_space<vmem>>, %arg13: memref<1x64xf32, #tpu.memory_space<vmem>>, %arg14: memref<1x64xf32, #tpu.memory_space<vmem>>, %arg15: memref<32x128xf32, #tpu.memory_space<vmem>>) attributes {dimension_semantics = [#tpu.dimension_semantics<parallel>], iteration_bounds = array<i64: 2>, scalar_prefetch = 0 : i64, scratch_operands = 0 : i64, tpu.core_type = #tpu.core_type<tc>, window_params = [{transform_indices = @transform_0, window_bounds = array<i64: 2, 32, 64>}, {pipeline_mode = #tpu.pipeline_mode<synchronous>, transform_indices = @transform_1, window_bounds = array<i64: 64, 192>}, {pipeline_mode = #tpu.pipeline_mode<synchronous>, transform_indices = @transform_2, window_bounds = array<i64: 1, 192>}, {pipeline_mode = #tpu.pipeline_mode<synchronous>, transform_indices = @transform_3, window_bounds = array<i64: 64, 64>}, {pipeline_mode = #tpu.pipeline_mode<synchronous>, transform_indices = @transform_4, window_bounds = array<i64: 64, 64>}, {pipeline_mode = #tpu.pipeline_mode<synchronous>, transform_indices = @transform_5, window_bounds = array<i64: 1, 64>}, {pipeline_mode = #tpu.pipeline_mode<synchronous>, transform_indices = @transform_6, window_bounds = array<i64: 1, 64>}, {pipeline_mode = #tpu.pipeline_mode<synchronous>, transform_indices = @transform_7, window_bounds = array<i64: 1, 64>}, {pipeline_mode = #tpu.pipeline_mode<synchronous>, transform_indices = @transform_8, window_bounds = array<i64: 64, 256>}, {pipeline_mode = #tpu.pipeline_mode<synchronous>, transform_indices = @transform_9, window_bounds = array<i64: 1, 256>}, {pipeline_mode = #tpu.pipeline_mode<synchronous>, transform_indices = @transform_10, window_bounds = array<i64: 256, 64>}, {pipeline_mode = #tpu.pipeline_mode<synchronous>, transform_indices = @transform_11, window_bounds = array<i64: 1, 64>}, {pipeline_mode = #tpu.pipeline_mode<synchronous>, transform_indices = @transform_12, window_bounds = array<i64: 1, 64>}, {pipeline_mode = #tpu.pipeline_mode<synchronous>, transform_indices = @transform_13, window_bounds = array<i64: 1, 64>}, {transform_indices = @transform_14, window_bounds = array<i64: 32, 128>}]} {
    %c0 = arith.constant 0 : index
    %c0_0 = arith.constant 0 : index
    %0 = vector.load %arg2[%c0, %c0_0] : memref<64x192xf32, #tpu.memory_space<vmem>>, vector<64x192xf32>
    %c0_1 = arith.constant 0 : index
    %c0_2 = arith.constant 0 : index
    %1 = vector.load %arg3[%c0_1, %c0_2] : memref<1x192xf32, #tpu.memory_space<vmem>>, vector<1x192xf32>
    %c0_3 = arith.constant 0 : index
    %c0_4 = arith.constant 0 : index
    %2 = vector.load %arg4[%c0_3, %c0_4] : memref<64x64xf32, #tpu.memory_space<vmem>>, vector<64x64xf32>
    %c0_5 = arith.constant 0 : index
    %c0_6 = arith.constant 0 : index
    %3 = vector.load %arg5[%c0_5, %c0_6] : memref<64x64xf32, #tpu.memory_space<vmem>>, vector<64x64xf32>
    %c0_7 = arith.constant 0 : index
    %c0_8 = arith.constant 0 : index
    %4 = vector.load %arg6[%c0_7, %c0_8] : memref<1x64xf32, #tpu.memory_space<vmem>>, vector<1x64xf32>
    %c0_9 = arith.constant 0 : index
    %c0_10 = arith.constant 0 : index
    %c0_11 = arith.constant 0 : index
    %5 = vector.load %arg1[%c0_9, %c0_10, %c0_11] : memref<2x32x64xf32, #tpu.memory_space<vmem>>, vector<1x32x64xf32>
    %6 = vector.shape_cast %5 : vector<1x32x64xf32> to vector<32x64xf32>
    %cst = arith.constant dense<0.000000e+00> : vector<32x192xf32>
    %7 = tpu.matmul %6, %0, %cst {dimension_numbers = #tpu.dot_dimension_numbers<[1], [0], [0], [1], [0, 0, 1, 1], [], []>} : vector<32x64xf32>, vector<64x192xf32>, vector<32x192xf32> -> vector<32x192xf32>
    %8 = vector.broadcast %1 : vector<1x192xf32> to vector<32x192xf32>
    %9 = arith.addf %7, %8 : vector<32x192xf32>
    %10 = vector.extract_strided_slice %9 {offsets = [0, 0], sizes = [32, 64], strides = [1, 1]} : vector<32x192xf32> to vector<32x64xf32>
    %cst_12 = arith.constant 0.353553385 : f32
    %11 = vector.broadcast %cst_12 : f32 to vector<32x64xf32>
    %12 = arith.mulf %10, %11 : vector<32x64xf32>
    %13 = vector.extract_strided_slice %9 {offsets = [0, 64], sizes = [32, 64], strides = [1, 1]} : vector<32x192xf32> to vector<32x64xf32>
    %14 = vector.extract_strided_slice %9 {offsets = [0, 128], sizes = [32, 64], strides = [1, 1]} : vector<32x192xf32> to vector<32x64xf32>
    %c1 = arith.constant 1 : index
    %c0_13 = arith.constant 0 : index
    %c0_14 = arith.constant 0 : index
    %15 = vector.load %arg1[%c1, %c0_13, %c0_14] : memref<2x32x64xf32, #tpu.memory_space<vmem>>, vector<1x32x64xf32>
    %16 = vector.shape_cast %15 : vector<1x32x64xf32> to vector<32x64xf32>
    %cst_15 = arith.constant dense<0.000000e+00> : vector<32x192xf32>
    %17 = tpu.matmul %16, %0, %cst_15 {dimension_numbers = #tpu.dot_dimension_numbers<[1], [0], [0], [1], [0, 0, 1, 1], [], []>} : vector<32x64xf32>, vector<64x192xf32>, vector<32x192xf32> -> vector<32x192xf32>
    %18 = vector.broadcast %1 : vector<1x192xf32> to vector<32x192xf32>
    %19 = arith.addf %17, %18 : vector<32x192xf32>
    %20 = vector.extract_strided_slice %19 {offsets = [0, 0], sizes = [32, 64], strides = [1, 1]} : vector<32x192xf32> to vector<32x64xf32>
    %cst_16 = arith.constant 0.353553385 : f32
    %21 = vector.broadcast %cst_16 : f32 to vector<32x64xf32>
    %22 = arith.mulf %20, %21 : vector<32x64xf32>
    %23 = vector.extract_strided_slice %19 {offsets = [0, 64], sizes = [32, 64], strides = [1, 1]} : vector<32x192xf32> to vector<32x64xf32>
    %24 = vector.extract_strided_slice %19 {offsets = [0, 128], sizes = [32, 64], strides = [1, 1]} : vector<32x192xf32> to vector<32x64xf32>
    %25 = arith.mulf %12, %13 : vector<32x64xf32>
    %cst_17 = arith.constant dense<0.000000e+00> : vector<32x64xf32>
    %26 = tpu.matmul %25, %2, %cst_17 {dimension_numbers = #tpu.dot_dimension_numbers<[1], [0], [0], [1], [0, 0, 1, 1], [], []>} : vector<32x64xf32>, vector<64x64xf32>, vector<32x64xf32> -> vector<32x64xf32>
    %27 = arith.mulf %12, %23 : vector<32x64xf32>
    %cst_18 = arith.constant dense<0.000000e+00> : vector<32x64xf32>
    %28 = tpu.matmul %27, %2, %cst_18 {dimension_numbers = #tpu.dot_dimension_numbers<[1], [0], [0], [1], [0, 0, 1, 1], [], []>} : vector<32x64xf32>, vector<64x64xf32>, vector<32x64xf32> -> vector<32x64xf32>
    %29 = arith.maximumf %26, %28 : vector<32x64xf32>
    %30 = arith.subf %26, %29 : vector<32x64xf32>
    %31 = math.exp %30 : vector<32x64xf32>
    %32 = arith.subf %28, %29 : vector<32x64xf32>
    %33 = math.exp %32 : vector<32x64xf32>
    %34 = arith.addf %31, %33 : vector<32x64xf32>
    %35 = arith.mulf %31, %14 : vector<32x64xf32>
    %36 = arith.mulf %33, %24 : vector<32x64xf32>
    %37 = arith.addf %35, %36 : vector<32x64xf32>
    %38 = arith.divf %37, %34 : vector<32x64xf32>
    %cst_19 = arith.constant dense<0.000000e+00> : vector<32x64xf32>
    %39 = tpu.matmul %38, %3, %cst_19 {dimension_numbers = #tpu.dot_dimension_numbers<[1], [0], [0], [1], [0, 0, 1, 1], [], []>} : vector<32x64xf32>, vector<64x64xf32>, vector<32x64xf32> -> vector<32x64xf32>
    %40 = vector.broadcast %4 : vector<1x64xf32> to vector<32x64xf32>
    %41 = arith.addf %39, %40 : vector<32x64xf32>
    %42 = arith.addf %6, %41 : vector<32x64xf32>
    %c0_20 = arith.constant 0 : index
    %c0_21 = arith.constant 0 : index
    %43 = vector.load %arg7[%c0_20, %c0_21] : memref<1x64xf32, #tpu.memory_space<vmem>>, vector<1x64xf32>
    %c0_22 = arith.constant 0 : index
    %c0_23 = arith.constant 0 : index
    %44 = vector.load %arg8[%c0_22, %c0_23] : memref<1x64xf32, #tpu.memory_space<vmem>>, vector<1x64xf32>
    %cst_24 = arith.constant dense<0.000000e+00> : vector<32xf32>
    %45 = vector.multi_reduction <add>, %42, %cst_24 [1] : vector<32x64xf32> to vector<32xf32>
    %46 = vector.shape_cast %45 : vector<32xf32> to vector<32x1xf32>
    %cst_25 = arith.constant 6.400000e+01 : f32
    %47 = vector.broadcast %cst_25 : f32 to vector<32x1xf32>
    %48 = arith.divf %46, %47 : vector<32x1xf32>
    %49 = vector.broadcast %48 : vector<32x1xf32> to vector<32x64xf32>
    %50 = arith.subf %42, %49 : vector<32x64xf32>
    %51 = arith.mulf %50, %50 : vector<32x64xf32>
    %cst_26 = arith.constant dense<0.000000e+00> : vector<32xf32>
    %52 = vector.multi_reduction <add>, %51, %cst_26 [1] : vector<32x64xf32> to vector<32xf32>
    %53 = vector.shape_cast %52 : vector<32xf32> to vector<32x1xf32>
    %cst_27 = arith.constant 6.400000e+01 : f32
    %54 = vector.broadcast %cst_27 : f32 to vector<32x1xf32>
    %55 = arith.divf %53, %54 : vector<32x1xf32>
    %cst_28 = arith.constant 9.99999974E-6 : f32
    %56 = vector.broadcast %cst_28 : f32 to vector<32x1xf32>
    %57 = arith.addf %55, %56 : vector<32x1xf32>
    %58 = math.rsqrt %57 : vector<32x1xf32>
    %59 = vector.broadcast %58 : vector<32x1xf32> to vector<32x64xf32>
    %60 = arith.mulf %50, %59 : vector<32x64xf32>
    %61 = vector.broadcast %43 : vector<1x64xf32> to vector<32x64xf32>
    %62 = arith.mulf %60, %61 : vector<32x64xf32>
    %63 = vector.broadcast %44 : vector<1x64xf32> to vector<32x64xf32>
    %64 = arith.addf %62, %63 : vector<32x64xf32>
    %c0_29 = arith.constant 0 : index
    %c0_30 = arith.constant 0 : index
    %65 = vector.load %arg9[%c0_29, %c0_30] : memref<64x256xf32, #tpu.memory_space<vmem>>, vector<64x256xf32>
    %cst_31 = arith.constant dense<0.000000e+00> : vector<32x256xf32>
    %66 = tpu.matmul %64, %65, %cst_31 {dimension_numbers = #tpu.dot_dimension_numbers<[1], [0], [0], [1], [0, 0, 1, 1], [], []>} : vector<32x64xf32>, vector<64x256xf32>, vector<32x256xf32> -> vector<32x256xf32>
    %c0_32 = arith.constant 0 : index
    %c0_33 = arith.constant 0 : index
    %67 = vector.load %arg10[%c0_32, %c0_33] : memref<1x256xf32, #tpu.memory_space<vmem>>, vector<1x256xf32>
    %68 = vector.broadcast %67 : vector<1x256xf32> to vector<32x256xf32>
    %69 = arith.addf %66, %68 : vector<32x256xf32>
    %cst_34 = arith.constant 0.000000e+00 : f32
    %70 = vector.broadcast %cst_34 : f32 to vector<32x256xf32>
    %71 = arith.maximumf %69, %70 : vector<32x256xf32>
    %c0_35 = arith.constant 0 : index
    %c0_36 = arith.constant 0 : index
    %72 = vector.load %arg11[%c0_35, %c0_36] : memref<256x64xf32, #tpu.memory_space<vmem>>, vector<256x64xf32>
    %cst_37 = arith.constant dense<0.000000e+00> : vector<32x64xf32>
    %73 = tpu.matmul %71, %72, %cst_37 {dimension_numbers = #tpu.dot_dimension_numbers<[1], [0], [0], [1], [0, 0, 1, 1], [], []>} : vector<32x256xf32>, vector<256x64xf32>, vector<32x64xf32> -> vector<32x64xf32>
    %c0_38 = arith.constant 0 : index
    %c0_39 = arith.constant 0 : index
    %74 = vector.load %arg12[%c0_38, %c0_39] : memref<1x64xf32, #tpu.memory_space<vmem>>, vector<1x64xf32>
    %75 = vector.broadcast %74 : vector<1x64xf32> to vector<32x64xf32>
    %76 = arith.addf %73, %75 : vector<32x64xf32>
    %77 = arith.addf %64, %76 : vector<32x64xf32>
    %c0_40 = arith.constant 0 : index
    %c0_41 = arith.constant 0 : index
    %78 = vector.load %arg13[%c0_40, %c0_41] : memref<1x64xf32, #tpu.memory_space<vmem>>, vector<1x64xf32>
    %c0_42 = arith.constant 0 : index
    %c0_43 = arith.constant 0 : index
    %79 = vector.load %arg14[%c0_42, %c0_43] : memref<1x64xf32, #tpu.memory_space<vmem>>, vector<1x64xf32>
    %cst_44 = arith.constant dense<0.000000e+00> : vector<32xf32>
    %80 = vector.multi_reduction <add>, %77, %cst_44 [1] : vector<32x64xf32> to vector<32xf32>
    %81 = vector.shape_cast %80 : vector<32xf32> to vector<32x1xf32>
    %cst_45 = arith.constant 6.400000e+01 : f32
    %82 = vector.broadcast %cst_45 : f32 to vector<32x1xf32>
    %83 = arith.divf %81, %82 : vector<32x1xf32>
    %84 = vector.broadcast %83 : vector<32x1xf32> to vector<32x64xf32>
    %85 = arith.subf %77, %84 : vector<32x64xf32>
    %86 = arith.mulf %85, %85 : vector<32x64xf32>
    %cst_46 = arith.constant dense<0.000000e+00> : vector<32xf32>
    %87 = vector.multi_reduction <add>, %86, %cst_46 [1] : vector<32x64xf32> to vector<32xf32>
    %88 = vector.shape_cast %87 : vector<32xf32> to vector<32x1xf32>
    %cst_47 = arith.constant 6.400000e+01 : f32
    %89 = vector.broadcast %cst_47 : f32 to vector<32x1xf32>
    %90 = arith.divf %88, %89 : vector<32x1xf32>
    %cst_48 = arith.constant 9.99999974E-6 : f32
    %91 = vector.broadcast %cst_48 : f32 to vector<32x1xf32>
    %92 = arith.addf %90, %91 : vector<32x1xf32>
    %93 = math.rsqrt %92 : vector<32x1xf32>
    %94 = vector.broadcast %93 : vector<32x1xf32> to vector<32x64xf32>
    %95 = arith.mulf %85, %94 : vector<32x64xf32>
    %96 = vector.broadcast %78 : vector<1x64xf32> to vector<32x64xf32>
    %97 = arith.mulf %95, %96 : vector<32x64xf32>
    %98 = vector.broadcast %79 : vector<1x64xf32> to vector<32x64xf32>
    %99 = arith.addf %97, %98 : vector<32x64xf32>
    %100 = arith.mulf %22, %13 : vector<32x64xf32>
    %cst_49 = arith.constant dense<0.000000e+00> : vector<32x64xf32>
    %101 = tpu.matmul %100, %2, %cst_49 {dimension_numbers = #tpu.dot_dimension_numbers<[1], [0], [0], [1], [0, 0, 1, 1], [], []>} : vector<32x64xf32>, vector<64x64xf32>, vector<32x64xf32> -> vector<32x64xf32>
    %102 = arith.mulf %22, %23 : vector<32x64xf32>
    %cst_50 = arith.constant dense<0.000000e+00> : vector<32x64xf32>
    %103 = tpu.matmul %102, %2, %cst_50 {dimension_numbers = #tpu.dot_dimension_numbers<[1], [0], [0], [1], [0, 0, 1, 1], [], []>} : vector<32x64xf32>, vector<64x64xf32>, vector<32x64xf32> -> vector<32x64xf32>
    %104 = arith.maximumf %101, %103 : vector<32x64xf32>
    %105 = arith.subf %101, %104 : vector<32x64xf32>
    %106 = math.exp %105 : vector<32x64xf32>
    %107 = arith.subf %103, %104 : vector<32x64xf32>
    %108 = math.exp %107 : vector<32x64xf32>
    %109 = arith.addf %106, %108 : vector<32x64xf32>
    %110 = arith.mulf %106, %14 : vector<32x64xf32>
    %111 = arith.mulf %108, %24 : vector<32x64xf32>
    %112 = arith.addf %110, %111 : vector<32x64xf32>
    %113 = arith.divf %112, %109 : vector<32x64xf32>
    %cst_51 = arith.constant dense<0.000000e+00> : vector<32x64xf32>
    %114 = tpu.matmul %113, %3, %cst_51 {dimension_numbers = #tpu.dot_dimension_numbers<[1], [0], [0], [1], [0, 0, 1, 1], [], []>} : vector<32x64xf32>, vector<64x64xf32>, vector<32x64xf32> -> vector<32x64xf32>
    %115 = vector.broadcast %4 : vector<1x64xf32> to vector<32x64xf32>
    %116 = arith.addf %114, %115 : vector<32x64xf32>
    %117 = arith.addf %16, %116 : vector<32x64xf32>
    %c0_52 = arith.constant 0 : index
    %c0_53 = arith.constant 0 : index
    %118 = vector.load %arg7[%c0_52, %c0_53] : memref<1x64xf32, #tpu.memory_space<vmem>>, vector<1x64xf32>
    %c0_54 = arith.constant 0 : index
    %c0_55 = arith.constant 0 : index
    %119 = vector.load %arg8[%c0_54, %c0_55] : memref<1x64xf32, #tpu.memory_space<vmem>>, vector<1x64xf32>
    %cst_56 = arith.constant dense<0.000000e+00> : vector<32xf32>
    %120 = vector.multi_reduction <add>, %117, %cst_56 [1] : vector<32x64xf32> to vector<32xf32>
    %121 = vector.shape_cast %120 : vector<32xf32> to vector<32x1xf32>
    %cst_57 = arith.constant 6.400000e+01 : f32
    %122 = vector.broadcast %cst_57 : f32 to vector<32x1xf32>
    %123 = arith.divf %121, %122 : vector<32x1xf32>
    %124 = vector.broadcast %123 : vector<32x1xf32> to vector<32x64xf32>
    %125 = arith.subf %117, %124 : vector<32x64xf32>
    %126 = arith.mulf %125, %125 : vector<32x64xf32>
    %cst_58 = arith.constant dense<0.000000e+00> : vector<32xf32>
    %127 = vector.multi_reduction <add>, %126, %cst_58 [1] : vector<32x64xf32> to vector<32xf32>
    %128 = vector.shape_cast %127 : vector<32xf32> to vector<32x1xf32>
    %cst_59 = arith.constant 6.400000e+01 : f32
    %129 = vector.broadcast %cst_59 : f32 to vector<32x1xf32>
    %130 = arith.divf %128, %129 : vector<32x1xf32>
    %cst_60 = arith.constant 9.99999974E-6 : f32
    %131 = vector.broadcast %cst_60 : f32 to vector<32x1xf32>
    %132 = arith.addf %130, %131 : vector<32x1xf32>
    %133 = math.rsqrt %132 : vector<32x1xf32>
    %134 = vector.broadcast %133 : vector<32x1xf32> to vector<32x64xf32>
    %135 = arith.mulf %125, %134 : vector<32x64xf32>
    %136 = vector.broadcast %118 : vector<1x64xf32> to vector<32x64xf32>
    %137 = arith.mulf %135, %136 : vector<32x64xf32>
    %138 = vector.broadcast %119 : vector<1x64xf32> to vector<32x64xf32>
    %139 = arith.addf %137, %138 : vector<32x64xf32>
    %c0_61 = arith.constant 0 : index
    %c0_62 = arith.constant 0 : index
    %140 = vector.load %arg9[%c0_61, %c0_62] : memref<64x256xf32, #tpu.memory_space<vmem>>, vector<64x256xf32>
    %cst_63 = arith.constant dense<0.000000e+00> : vector<32x256xf32>
    %141 = tpu.matmul %139, %140, %cst_63 {dimension_numbers = #tpu.dot_dimension_numbers<[1], [0], [0], [1], [0, 0, 1, 1], [], []>} : vector<32x64xf32>, vector<64x256xf32>, vector<32x256xf32> -> vector<32x256xf32>
    %c0_64 = arith.constant 0 : index
    %c0_65 = arith.constant 0 : index
    %142 = vector.load %arg10[%c0_64, %c0_65] : memref<1x256xf32, #tpu.memory_space<vmem>>, vector<1x256xf32>
    %143 = vector.broadcast %142 : vector<1x256xf32> to vector<32x256xf32>
    %144 = arith.addf %141, %143 : vector<32x256xf32>
    %cst_66 = arith.constant 0.000000e+00 : f32
    %145 = vector.broadcast %cst_66 : f32 to vector<32x256xf32>
    %146 = arith.maximumf %144, %145 : vector<32x256xf32>
    %c0_67 = arith.constant 0 : index
    %c0_68 = arith.constant 0 : index
    %147 = vector.load %arg11[%c0_67, %c0_68] : memref<256x64xf32, #tpu.memory_space<vmem>>, vector<256x64xf32>
    %cst_69 = arith.constant dense<0.000000e+00> : vector<32x64xf32>
    %148 = tpu.matmul %146, %147, %cst_69 {dimension_numbers = #tpu.dot_dimension_numbers<[1], [0], [0], [1], [0, 0, 1, 1], [], []>} : vector<32x256xf32>, vector<256x64xf32>, vector<32x64xf32> -> vector<32x64xf32>
    %c0_70 = arith.constant 0 : index
    %c0_71 = arith.constant 0 : index
    %149 = vector.load %arg12[%c0_70, %c0_71] : memref<1x64xf32, #tpu.memory_space<vmem>>, vector<1x64xf32>
    %150 = vector.broadcast %149 : vector<1x64xf32> to vector<32x64xf32>
    %151 = arith.addf %148, %150 : vector<32x64xf32>
    %152 = arith.addf %139, %151 : vector<32x64xf32>
    %c0_72 = arith.constant 0 : index
    %c0_73 = arith.constant 0 : index
    %153 = vector.load %arg13[%c0_72, %c0_73] : memref<1x64xf32, #tpu.memory_space<vmem>>, vector<1x64xf32>
    %c0_74 = arith.constant 0 : index
    %c0_75 = arith.constant 0 : index
    %154 = vector.load %arg14[%c0_74, %c0_75] : memref<1x64xf32, #tpu.memory_space<vmem>>, vector<1x64xf32>
    %cst_76 = arith.constant dense<0.000000e+00> : vector<32xf32>
    %155 = vector.multi_reduction <add>, %152, %cst_76 [1] : vector<32x64xf32> to vector<32xf32>
    %156 = vector.shape_cast %155 : vector<32xf32> to vector<32x1xf32>
    %cst_77 = arith.constant 6.400000e+01 : f32
    %157 = vector.broadcast %cst_77 : f32 to vector<32x1xf32>
    %158 = arith.divf %156, %157 : vector<32x1xf32>
    %159 = vector.broadcast %158 : vector<32x1xf32> to vector<32x64xf32>
    %160 = arith.subf %152, %159 : vector<32x64xf32>
    %161 = arith.mulf %160, %160 : vector<32x64xf32>
    %cst_78 = arith.constant dense<0.000000e+00> : vector<32xf32>
    %162 = vector.multi_reduction <add>, %161, %cst_78 [1] : vector<32x64xf32> to vector<32xf32>
    %163 = vector.shape_cast %162 : vector<32xf32> to vector<32x1xf32>
    %cst_79 = arith.constant 6.400000e+01 : f32
    %164 = vector.broadcast %cst_79 : f32 to vector<32x1xf32>
    %165 = arith.divf %163, %164 : vector<32x1xf32>
    %cst_80 = arith.constant 9.99999974E-6 : f32
    %166 = vector.broadcast %cst_80 : f32 to vector<32x1xf32>
    %167 = arith.addf %165, %166 : vector<32x1xf32>
    %168 = math.rsqrt %167 : vector<32x1xf32>
    %169 = vector.broadcast %168 : vector<32x1xf32> to vector<32x64xf32>
    %170 = arith.mulf %160, %169 : vector<32x64xf32>
    %171 = vector.broadcast %153 : vector<1x64xf32> to vector<32x64xf32>
    %172 = arith.mulf %170, %171 : vector<32x64xf32>
    %173 = vector.broadcast %154 : vector<1x64xf32> to vector<32x64xf32>
    %174 = arith.addf %172, %173 : vector<32x64xf32>
    %175 = tpu.concatenate %99, %174 in 1 : vector<32x64xf32>, vector<32x64xf32> -> vector<32x128xf32>
    %c0_81 = arith.constant 0 : index
    %c0_82 = arith.constant 0 : index
    %176 = vector.load %arg15[%c0_81, %c0_82] : memref<32x128xf32, #tpu.memory_space<vmem>>, vector<32x128xf32>
    tpu.vector_store %arg15[%c0_81, %c0_82], %175 {strides = array<i32>} : memref<32x128xf32, #tpu.memory_space<vmem>>, vector<32x128xf32>,
    return
  }
  func.func @transform_0(%arg0: i32) -> (i32, i32, i32) {
    %c0_i32 = arith.constant 0 : i32
    %c0_i32_0 = arith.constant 0 : i32
    %c0_i32_1 = arith.constant 0 : i32
    return %c0_i32, %arg0, %c0_i32_0 : i32, i32, i32
  }
  func.func @transform_1(%arg0: i32) -> (i32, i32) {
    %c0_i32 = arith.constant 0 : i32
    %c0_i32_0 = arith.constant 0 : i32
    %c0_i32_1 = arith.constant 0 : i32
    return %c0_i32, %c0_i32_0 : i32, i32
  }
  func.func @transform_2(%arg0: i32) -> (i32, i32) {
    %c0_i32 = arith.constant 0 : i32
    %c0_i32_0 = arith.constant 0 : i32
    %c0_i32_1 = arith.constant 0 : i32
    return %c0_i32, %c0_i32_0 : i32, i32
  }
  func.func @transform_3(%arg0: i32) -> (i32, i32) {
    %c0_i32 = arith.constant 0 : i32
    %c0_i32_0 = arith.constant 0 : i32
    %c0_i32_1 = arith.constant 0 : i32
    return %c0_i32, %c0_i32_0 : i32, i32
  }
  func.func @transform_4(%arg0: i32) -> (i32, i32) {
    %c0_i32 = arith.constant 0 : i32
    %c0_i32_0 = arith.constant 0 : i32
    %c0_i32_1 = arith.constant 0 : i32
    return %c0_i32, %c0_i32_0 : i32, i32
  }
  func.func @transform_5(%arg0: i32) -> (i32, i32) {
    %c0_i32 = arith.constant 0 : i32
    %c0_i32_0 = arith.constant 0 : i32
    %c0_i32_1 = arith.constant 0 : i32
    return %c0_i32, %c0_i32_0 : i32, i32
  }
  func.func @transform_6(%arg0: i32) -> (i32, i32) {
    %c0_i32 = arith.constant 0 : i32
    %c0_i32_0 = arith.constant 0 : i32
    %c0_i32_1 = arith.constant 0 : i32
    return %c0_i32, %c0_i32_0 : i32, i32
  }
  func.func @transform_7(%arg0: i32) -> (i32, i32) {
    %c0_i32 = arith.constant 0 : i32
    %c0_i32_0 = arith.constant 0 : i32
    %c0_i32_1 = arith.constant 0 : i32
    return %c0_i32, %c0_i32_0 : i32, i32
  }
  func.func @transform_8(%arg0: i32) -> (i32, i32) {
    %c0_i32 = arith.constant 0 : i32
    %c0_i32_0 = arith.constant 0 : i32
    %c0_i32_1 = arith.constant 0 : i32
    return %c0_i32, %c0_i32_0 : i32, i32
  }
  func.func @transform_9(%arg0: i32) -> (i32, i32) {
    %c0_i32 = arith.constant 0 : i32
    %c0_i32_0 = arith.constant 0 : i32
    %c0_i32_1 = arith.constant 0 : i32
    return %c0_i32, %c0_i32_0 : i32, i32
  }
  func.func @transform_10(%arg0: i32) -> (i32, i32) {
    %c0_i32 = arith.constant 0 : i32
    %c0_i32_0 = arith.constant 0 : i32
    %c0_i32_1 = arith.constant 0 : i32
    return %c0_i32, %c0_i32_0 : i32, i32
  }
  func.func @transform_11(%arg0: i32) -> (i32, i32) {
    %c0_i32 = arith.constant 0 : i32
    %c0_i32_0 = arith.constant 0 : i32
    %c0_i32_1 = arith.constant 0 : i32
    return %c0_i32, %c0_i32_0 : i32, i32
  }
  func.func @transform_12(%arg0: i32) -> (i32, i32) {
    %c0_i32 = arith.constant 0 : i32
    %c0_i32_0 = arith.constant 0 : i32
    %c0_i32_1 = arith.constant 0 : i32
    return %c0_i32, %c0_i32_0 : i32, i32
  }
  func.func @transform_13(%arg0: i32) -> (i32, i32) {
    %c0_i32 = arith.constant 0 : i32
    %c0_i32_0 = arith.constant 0 : i32
    %c0_i32_1 = arith.constant 0 : i32
    return %c0_i32, %c0_i32_0 : i32, i32
  }
  func.func @transform_14(%arg0: i32) -> (i32, i32) {
    %c0_i32 = arith.constant 0 : i32
    %c0_i32_0 = arith.constant 0 : i32
    return %arg0, %c0_i32 : i32, i32
  }
}

</mosaic_0001>

<bundles_post_ra>
// kernel: _lambda_.1
= control target key start
LH: loop header
LB: loop body
LE: loop exit
PB: predicated region body
PF: predicated region fallthrough
CT: control target
= control target key end

     0   :  { %s3155_s29 = smov 0   ;;  %s3157_s30 = smov 0   ;;  %s4009_s0 = inlined_call_operand.vmem [shape: f32[2,64,64], index: 0, kind: input, shape index: {}]   ;;  %s4010_s1 = inlined_call_operand.vmem [shape: f32[64,192], index: 1, kind: input, shape index: {}]   ;;  %s4011_s2 = inlined_call_operand.vmem [shape: f32[1,192], index: 2, kind: input, shape index: {}]   ;;  %s4012_s3 = inlined_call_operand.vmem [shape: f32[64,64], index: 3, kind: input, shape index: {}]   ;;  %s4013_s4 = inlined_call_operand.vmem [shape: f32[64,64], index: 4, kind: input, shape index: {}]   ;;  %s4014_s5 = inlined_call_operand.vmem [shape: f32[1,64], index: 5, kind: input, shape index: {}]   ;;  %s4015_s6 = inlined_call_operand.vmem [shape: f32[1,64], index: 6, kind: input, shape index: {}]   ;;  %s4016_s7 = inlined_call_operand.vmem [shape: f32[1,64], index: 7, kind: input, shape index: {}]   ;;  %s4017_s8 = inlined_call_operand.vmem [shape: f32[64,256], index: 8, kind: input, shape index: {}]   ;;  %s4018_s9 = inlined_call_operand.vmem [shape: f32[1,256], index: 9, kind: input, shape index: {}]   ;;  %s4019_s10 = inlined_call_operand.vmem [shape: f32[256,64], index: 10, kind: input, shape index: {}]   ;;  %s4020_s11 = inlined_call_operand.vmem [shape: f32[1,64], index: 11, kind: input, shape index: {}]   ;;  %s4021_s12 = inlined_call_operand.vmem [shape: f32[1,64], index: 12, kind: input, shape index: {}]   ;;  %s4022_s13 = inlined_call_operand.vmem [shape: f32[1,64], index: 13, kind: input, shape index: {}]   ;;  %s4023_s14 = inlined_call_operand.vmem [shape: f32[64,128], index: 14, kind: output, shape index: {}]  }
   0x1   :  { %s3159_s15 = smov 0  }
   0x2 LB: > { %s3172_s17 = sadd.s32 1, %s3076_s15   ;;  %s31_s19 = sadd.s32 1, %s3072_s30  ;;  %s3076_s15 = sphi %s3159_s15, %s4041_s15   ;;  %s3072_s30 = sphi %s3157_s30, %s4040_s30   ;;  %s3068_s29 = sphi %s3155_s29, %s4039_s29  }
   0x3   : > { %s28_s18 = ssub.s32 %s3076_s15, %s3172_s17  ;;  %p38_p1 = scmp.ne.s32.totalorder %s3072_s30, %s3068_s29 }
   0x4   : > { %p29_p0 = scmp.eq.s32.totalorder %s28_s18, 0  ;;  %p39_p2 = scmp.eq.s32.totalorder %s3076_s15, 0 }
   0x5   : > { %p2367_p4 = scmp.ge.s32.totalorder %s3076_s15, 2 }
   0x6   : > { %s3181_s20 = scalar_select %p29_p0, %s3072_s30, %s31_s19  }
   0x7   : > { %p40_p3 = por %p39_p2, %p38_p1  ;;  %402 = sbr.rel (%p2367_p4) target bundleno = 22 (0x16), region = 68 }
   0xe   : > { %405 = sbr.rel (!%p40_p3) target bundleno = 22 (0x16), region = 72  ;;  %s407_s21 = sand.u32 (%p40_p3), 1, %s3072_s30  }
   0xf   : > { %s2427_s22 = sshll.u32 (%p40_p3), %s3076_s15, 5  ;;  %s2368_s23 = sshll.u32 (%p40_p3), %s407_s21, 6 }
  0x10   : > { %s412_s26 = scalar_lea.vmem (%p40_p3), %s4009_s0, %s2427_s22  ;;  %s409_s27 = scalar_lea.vmem (%p40_p3), [#allocation2], %s2368_s23 }
  0x11   : > { %v454_v0 = vld [vmem:[%s412_s26] sm:$0xff] (%p40_p3)  ;;  %v456_v1 = vld [vmem:[%s412_s26 + $0x8] sm:$0xff] (%p40_p3)  ;;  %v458_v2 = vld [vmem:[%s412_s26 + $0x10] sm:$0xff] (%p40_p3) }
  0x12   : > { %455 = vst [vmem:[%s409_s27] sm:$0xff] (%p40_p3), %v454_v0  ;;  %457 = vst [vmem:[%s409_s27 + $0x8] sm:$0xff] (%p40_p3), %v456_v1  ;;  %v460_v3 = vld [vmem:[%s412_s26 + $0x18] sm:$0xff] (%p40_p3)  ;;  %v462_v4 = vld [vmem:[%s412_s26 + $0x40] sm:$0xff] (%p40_p3) }
  0x13   : > { %459 = vst [vmem:[%s409_s27 + $0x10] sm:$0xff] (%p40_p3), %v458_v2  ;;  %v464_v5 = vld [vmem:[%s412_s26 + $0x48] sm:$0xff] (%p40_p3)  ;;  %461 = vst [vmem:[%s409_s27 + $0x18] sm:$0xff] (%p40_p3), %v460_v3  ;;  %v466_v6 = vld [vmem:[%s412_s26 + $0x50] sm:$0xff] (%p40_p3) }
  0x14   : > { %463 = vst [vmem:[%s409_s27 + $0x20] sm:$0xff] (%p40_p3), %v462_v4  ;;  %465 = vst [vmem:[%s409_s27 + $0x28] sm:$0xff] (%p40_p3), %v464_v5  ;;  %v468_v7 = vld [vmem:[%s412_s26 + $0x58] sm:$0xff] (%p40_p3) }
  0x15   : > { %467 = vst [vmem:[%s409_s27 + $0x30] sm:$0xff] %v466_v6  ;;  %469 = vst [vmem:[%s409_s27 + $0x38] sm:$0xff] %v468_v7 }
  0x16 PF: > { %p2371_p5 = scmp.ge.s32.totalorder %s3076_s15, 1  ;;  %p474_p6 = scmp.lt.s32.totalorder %s3076_s15, 3 }
  0x18   : > { %p475_p7 = pnand %p2371_p5, %p474_p6 }
  0x1a   : > { %478 = sbr.rel (%p475_p7) target bundleno = 2871 (0xb37), region = 110 }
  0x21   : > { %v534_v8 = vld [vmem:[%s4010_s1 + $0x8] sm:$0xff]  ;;  %v536_v9 = vld [vmem:[%s4010_s1 + $0x18] sm:$0xff]  ;;  %v533_v10 = vld [vmem:[%s4010_s1] sm:$0xff]  ;;  %v4026_v15 = vmov 0.0   ;;  %s481_s24 = sand.u32 1, %s3068_s29   ;;  %vm582_vm0 = vcmask 523264   ;;  %v572_v50 = vlaneseq }
  0x22   : > { %v2720_v11 = vpack.c.bf16 %v536_v9, %v534_v8  ;;  %v535_v12 = vld [vmem:[%s4010_s1 + $0x10] sm:$0xff]  ;;  %v538_v13 = vld [vmem:[%s4010_s1 + $0x28] sm:$0xff]  ;;  %v540_v14 = vld [vmem:[%s4010_s1 + $0x38] sm:$0xff]  ;;  %659 = vmatprep.mubr.f32.mxu1 %v4026_v15  ;;  %s2372_s28 = sshll.u32 %s481_s24, 6  ;;  %s3079_s25 = smov 64  }
  0x23   : > { %v2722_v16 = vpack.c.bf16 %v535_v12, %v533_v10  ;;  %v2724_v17 = vpack.c.bf16 %v540_v14, %v538_v13  ;;  %v537_v18 = vld [vmem:[%s4010_s1 + $0x20] sm:$0xff]  ;;  %v539_v19 = vld [vmem:[%s4010_s1 + $0x30] sm:$0xff]  ;;  %v542_v20 = vld [vmem:[%s4010_s1 + $0x48] sm:$0xff]  ;;  %s3241_s18 = scalar_lea.vmem [#allocation2], %s2372_s28  ;;  %v3314_v51 = vshrl.u32 %v572_v50, 7  ;;  %s4038_s21 = sadd.s32 4294967295, %s3076_s15  }
  0x24   : > { %2721 = vmatprep.subr.bf16.mxu1 %v2720_v11  ;;  %v544_v21 = vld [vmem:[%s4010_s1 + $0x58] sm:$0xff]  ;;  %v2726_v22 = vpack.c.bf16 %v539_v19, %v537_v18  ;;  %v541_v24 = vld [vmem:[%s4010_s1 + $0x40] sm:$0xff]  ;;  %v543_v25 = vld [vmem:[%s4010_s1 + $0x50] sm:$0xff]  ;;  %s2373_s22 = sshll.u32 %s4038_s21, 2 }
  0x25   : > { %2723 = vmatpush1.bf16.msra.mxu1 %v2722_v16  ;;  %v2728_v23 = vpack.c.bf16 %v544_v21, %v542_v20  ;;  %v546_v26 = vld [vmem:[%s4010_s1 + $0x68] sm:$0xff]  ;;  %v548_v27 = vld [vmem:[%s4010_s1 + $0x78] sm:$0xff]  ;;  %v2730_v28 = vpack.c.bf16 %v543_v25, %v541_v24  ;;  %v545_v30 = vld [vmem:[%s4010_s1 + $0x60] sm:$0xff]  ;;  %v4025_v55 = vsub.s32 0, %v3314_v51  ;;  %p528_p8 = scmp.lt.s32.totalorder %s2373_s22, 7 }
  0x26   : > { %2725 = vmatprep.subr.bf16.mxu1 %v2724_v17  ;;  %v2732_v29 = vpack.c.bf16 %v548_v27, %v546_v26  ;;  %v547_v31 = vld [vmem:[%s4010_s1 + $0x70] sm:$0xff]  ;;  %v3244_v33 = vld [vmem:[%s3241_s18] sm:$0xff]  ;;  %v3250_v34 = vld [vmem:[%s3241_s18 + $0x8] sm:$0xff] }
  0x27   : > { %v2734_v32 = vpack.c.bf16 %v547_v31, %v545_v30  ;;  %v3256_v35 = vld [vmem:[%s3241_s18 + $0x10] sm:$0xff]  ;;  %v3262_v36 = vld [vmem:[%s3241_s18 + $0x18] sm:$0xff]  ;;  %v2379_v37 = vld [vmem:[%s3241_s18 + $0x20] sm:$0xff]  ;;  %s4043_s22 = smov (!%p528_p8, %s2373_s22), 7 }
  0x28   : > { %v2380_v38 = vld [vmem:[%s3241_s18 + $0x28] sm:$0xff]  ;;  %v2381_v39 = vld [vmem:[%s3241_s18 + $0x30] sm:$0xff]  ;;  %v2382_v40 = vld [vmem:[%s3241_s18 + $0x38] sm:$0xff]  ;;  %s2374_s23 = sshll.u32 %s4043_s22, 3 }
  0x29   : > { %2727 = vmatpush1.bf16.msra.mxu1 %v2726_v22  ;;  %v550_v41 = vld [vmem:[%s4012_s3] sm:$0xff]  ;;  %v551_v42 = vld [vmem:[%s4012_s3 + $0x8] sm:$0xff]  ;;  %v552_v43 = vld [vmem:[%s4012_s3 + $0x10] sm:$0xff] }
  0x2a   : > { %2729 = vmatprep.subr.bf16.mxu1 %v2728_v23  ;;  %v3287_v44 = vpack.c.bf16 %v551_v42, %v550_v41  ;;  %v553_v45 = vld [vmem:[%s4012_s3 + $0x18] sm:$0xff]  ;;  %v554_v47 = vld [vmem:[%s4012_s3 + $0x20] sm:$0xff]  ;;  %v555_v48 = vld [vmem:[%s4012_s3 + $0x28] sm:$0xff] }
  0x2b   : > { %v3292_v46 = vpack.c.bf16 %v553_v45, %v552_v43  ;;  %v3305_v49 = vpack.c.bf16 %v555_v48, %v554_v47  ;;  %v556_v52 = vld [vmem:[%s4012_s3 + $0x30] sm:$0xff]  ;;  %v557_v53 = vld [vmem:[%s4012_s3 + $0x38] sm:$0xff]  ;;  %v3332_v56 = vld [vmem:[%s4011_s2] sm:$0x3] }
  0x2c   : > { %2753 = vmatprep.subr.bf16.mxu0 %v3287_v44  ;;  %v3322_v54 = vpack.c.bf16 %v557_v53, %v556_v52  ;;  %v575_v57 = vrot.slane %v3332_v56, %v4025_v55 }
  0x2d   : > { %2731 = vmatpush1.bf16.msra.mxu1 %v2730_v28  ;;  %2755 = vmatpush3.bf16.msra.mxu0 %v3287_v44 }
  0x2e   : > { %2733 = vmatprep.subr.bf16.mxu1 %v2732_v29  ;;  %2757 = vmatprep.subr.bf16.mxu0 %v3292_v46 }
  0x31   : > { %2735 = vmatpush1.bf16.msra.mxu1 %v2734_v32  ;;  %2759 = vmatpush3.bf16.msra.mxu0 %v3292_v46 }
  0x32   : > { %2737 = vmatprep.subr.bf16.mxu1 %v2720_v11  ;;  %2761 = vmatprep.subr.bf16.mxu0 %v3305_v49 }
  0x34   : > { %2375 = vmatmul.mubr.msk.f32.vlgmr.msra.gmra.mrb[0].mxu1 %vm582_vm0, %v3244_v33 }
  0x35   : > { %2739 = vmatpush1.bf16.msra.mxu1 %v2722_v16  ;;  %665 = vmatprep.mubr.f32.mxu1 %v4026_v15 }
  0x36   : > { %2741 = vmatprep.subr.bf16.mxu1 %v2724_v17  ;;  %2763 = vmatpush3.bf16.msra.mxu0 %v3305_v49 }
  0x37   : > { %2765 = vmatprep.subr.bf16.mxu0 %v3322_v54 }
  0x38   : > { %2376 = vmatmul.mubr.msk.f32.gmra.mrb[2].mxu1 %vm582_vm0, %v3250_v34 }
  0x39   : > { %2743 = vmatpush1.bf16.msra.mxu1 %v2726_v22  ;;  %671 = vmatprep.mubr.f32.mxu1 %v4026_v15 }
  0x3a   : > { %2745 = vmatprep.subr.bf16.mxu1 %v2728_v23  ;;  %2767 = vmatpush3.bf16.msra.mxu0 %v3322_v54 }
  0x3c   : > { %2377 = vmatmul.mubr.msk.f32.gmra.mrb[4].mxu1 %vm582_vm0, %v3256_v35 }
  0x3d   : > { %2747 = vmatpush1.bf16.msra.mxu1 %v2730_v28  ;;  %677 = vmatprep.mubr.f32.mxu1 %v4026_v15 }
  0x3e   : > { %2749 = vmatprep.subr.bf16.mxu1 %v2732_v29 }
  0x40   : > { %2378 = vmatmul.mubr.msk.f32.gmra.mrb[6].mxu1 %vm582_vm0, %v3262_v36 }
  0x41   : > { %2751 = vmatpush1.bf16.msra.mxu1 %v2734_v32  ;;  %769 = vmatprep.mubr.f32.mxu1 %v4026_v15 }
  0x42   : > { %2769 = vmatprep.subr.bf16.mxu1 %v3287_v44 }
  0x44   : > { %2383 = vmatmul.mubr.msk.f32.vlgmr.msra.gmra.mrb[8].mxu1 %vm582_vm0, %v2379_v37 }
  0x45   : > { %775 = vmatprep.mubr.f32.mxu1 %v4026_v15  ;;  %2771 = vmatpush3.bf16.msra.mxu1 %v3287_v44 }
  0x46   : > { %2773 = vmatprep.subr.bf16.mxu1 %v3292_v46 }
  0x48   : > { %2384 = vmatmul.mubr.msk.f32.gmra.mrb[10].mxu1 %vm582_vm0, %v2380_v38 }
  0x49   : > { %781 = vmatprep.mubr.f32.mxu1 %v4026_v15  ;;  %2775 = vmatpush3.bf16.msra.mxu1 %v3292_v46 }
  0x4a   : > { %2777 = vmatprep.subr.bf16.mxu1 %v3305_v49 }
  0x4c   : > { %2385 = vmatmul.mubr.msk.f32.gmra.mrb[12].mxu1 %vm582_vm0, %v2381_v39 }
  0x4d   : > { %787 = vmatprep.mubr.f32.mxu1 %v4026_v15  ;;  %2779 = vmatpush3.bf16.msra.mxu1 %v3305_v49 }
  0x4e   : > { %2781 = vmatprep.subr.bf16.mxu1 %v3322_v54 }
  0x50   : > { %2386 = vmatmul.mubr.msk.f32.gmra.mrb[14].mxu1 %vm582_vm0, %v2382_v40 }
  0x51   : > { %2783 = vmatpush3.bf16.msra.mxu1 %v3322_v54 }
 0x107   : > { %v661_v58 = vpop.f32.mrb[0].mxu1 }
 0x108   : > { %v662_v59 = vadd.f32 %v661_v58, %v575_v57  ;;  %v3337_v60 = vpop.f32.mrb[1].mxu1 }
 0x10a   : > { %802 = vrot.lane.b32.xlu0 %v662_v59, %s3079_s25  ;;  %v684_v19 = vmul.f32 0.35355338, %v662_v59  ;;  %v558_v59 = vld [vmem:[%s4013_s4] sm:$0xff] }
 0x10b   : > { %v667_v61 = vpop.f32.mrb[2].mxu1 }
 0x10c   : > { %v668_v62 = vadd.f32 %v667_v61, %v575_v57  ;;  %v3340_v63 = vpop.f32.mrb[3].mxu1  ;;  %v559_v61 = vld [vmem:[%s4013_s4 + $0x8] sm:$0xff] }
 0x10e   : > { %804 = vrot.lane.b32.xlu1 %v668_v62, %s3079_s25  ;;  %v685_v24 = vmul.f32 0.35355338, %v668_v62  ;;  %v3397_v62 = vpack.c.bf16 %v559_v61, %v558_v59 }
 0x10f   : > { %v673_v0 = vpop.f32.mrb[4].mxu1 }
 0x110   : > { %v3343_v1 = vpop.f32.mrb[5].mxu1  ;;  %v674_v8 = vadd.f32 %v673_v0, %v575_v57  ;;  %2785 = vmatprep.subr.bf16.mxu0 %v3397_v62  ;;  %v560_v0 = vld [vmem:[%s4013_s4 + $0x10] sm:$0xff] }
 0x112   : > { %v686_v32 = vmul.f32 0.35355338, %v674_v8 }
 0x113   : > { %v679_v2 = vpop.f32.mrb[6].mxu1 }
 0x114   : > { %v3345_v3 = vpop.f32.mrb[7].mxu1  ;;  %v680_v12 = vadd.f32 %v679_v2, %v575_v57  ;;  %v561_v2 = vld [vmem:[%s4013_s4 + $0x18] sm:$0xff] }
 0x116   : > { %v687_v45 = vmul.f32 0.35355338, %v680_v12 }
 0x117   : > { %v771_v4 = vpop.f32.mrb[8].mxu1 }
 0x118   : > { %v772_v5 = vadd.f32 %v771_v4, %v575_v57  ;;  %v3347_v6 = vpop.f32.mrb[9].mxu1  ;;  %v3407_v4 = vpack.c.bf16 %v561_v2, %v560_v0 }
 0x11a   : > { %919 = vrot.lane.b32.xlu0 %v772_v5, %s3079_s25  ;;  %v794_v20 = vmul.f32 0.35355338, %v772_v5  ;;  %v562_v5 = vld [vmem:[%s4013_s4 + $0x20] sm:$0xff] }
 0x11b   : > { %v777_v7 = vpop.f32.mrb[10].mxu1 }
 0x11c   : > { %v778_v9 = vadd.f32 %v777_v7, %v575_v57  ;;  %v3350_v10 = vpop.f32.mrb[11].mxu1  ;;  %v563_v7 = vld [vmem:[%s4013_s4 + $0x28] sm:$0xff] }
 0x11e   : > { %921 = vrot.lane.b32.xlu1 %v778_v9, %s3079_s25  ;;  %806 = vrot.lane.b32.xlu0 %v674_v8, %s3079_s25  ;;  %v795_v25 = vmul.f32 0.35355338, %v778_v9  ;;  %v3417_v8 = vpack.c.bf16 %v563_v7, %v562_v5  ;;  %v564_v9 = vld [vmem:[%s4013_s4 + $0x30] sm:$0xff] }
 0x11f   : > { %v783_v11 = vpop.f32.mrb[12].mxu1 }
 0x120   : > { %v784_v13 = vadd.f32 %v783_v11, %v575_v57  ;;  %v3354_v14 = vpop.f32.mrb[13].mxu1  ;;  %v565_v11 = vld [vmem:[%s4013_s4 + $0x38] sm:$0xff] }
 0x122   : > { %923 = vrot.lane.b32.xlu1 %v784_v13, %s3079_s25  ;;  %808 = vrot.lane.b32.xlu0 %v680_v12, %s3079_s25  ;;  %v796_v37 = vmul.f32 0.35355338, %v784_v13  ;;  %v3427_v12 = vpack.c.bf16 %v565_v11, %v564_v9 }
 0x123   : > { %v789_v16 = vpop.f32.mrb[14].mxu1 }
 0x124   : > { %v3358_v17 = vadd.f32 %v789_v16, %v575_v57  ;;  %v3360_v18 = vpop.f32.mrb[15].mxu1 }
 0x126   : > { %925 = vrot.lane.b32.xlu1 %v3358_v17, %s3079_s25 }
 0x17c   : > { %v803_v21 = vpop.permute.xlu0 %802 }
 0x17d   : > { %v3364_v22 = vmul.f32 %v803_v21, %v794_v20  ;;  %v814_v23 = vmul.f32 %v803_v21, %v684_v19 }
 0x17f   : > { %2604 = vmatprep.mubr.msk.f32.mxu0 %vm582_vm0, %v814_v23 }
 0x180   : > { %v805_v26 = vpop.permute.xlu1 %804 }
 0x181   : > { %v815_v27 = vmul.f32 %v805_v26, %v685_v24  ;;  %v3367_v28 = vmul.f32 %v805_v26, %v795_v25 }
 0x183   : > { %2605 = vmatmul.mubr.msk.f32.vlgmr.msra.gmra.mrb[0].mxu0 %vm582_vm0, %v815_v27 }
 0x184   : > { %2787 = vmatpush3.bf16.msra.mxu0 %v3397_v62 }
 0x185   : > { %2789 = vmatprep.subr.bf16.mxu0 %v3407_v4 }
 0x188   : > { %2791 = vmatpush3.bf16.msra.mxu0 %v3407_v4 }
 0x189   : > { %2793 = vmatprep.subr.bf16.mxu0 %v3417_v8 }
 0x18c   : > { %v920_v29 = vpop.permute.xlu0 %919  ;;  %2795 = vmatpush3.bf16.msra.mxu0 %v3417_v8 }
 0x18d   : > { %v931_v30 = vmul.f32 %v920_v29, %v684_v19  ;;  %v3370_v31 = vmul.f32 %v920_v29, %v794_v20  ;;  %2797 = vmatprep.subr.bf16.mxu0 %v3427_v12 }
 0x18f   : > { %2626 = vmatprep.mubr.msk.f32.mxu1 %vm582_vm0, %v931_v30 }
 0x190   : > { %v922_v38 = vpop.permute.xlu1 %921  ;;  %v807_v39 = vpop.permute.xlu0 %806  ;;  %2799 = vmatpush3.bf16.msra.mxu0 %v3427_v12 }
 0x191   : > { %v932_v40 = vmul.f32 %v922_v38, %v685_v24  ;;  %v3373_v41 = vmul.f32 %v922_v38, %v795_v25  ;;  %v816_v42 = vmul.f32 %v807_v39, %v686_v32  ;;  %v3375_v43 = vmul.f32 %v807_v39, %v796_v37 }
 0x193   : > { %2607 = vmatprep.mubr.msk.f32.mxu0 %vm582_vm0, %v816_v42  ;;  %2627 = vmatmul.mubr.msk.f32.vlgmr.msra.gmra.mrb[16].mxu1 %vm582_vm0, %v932_v40 }
 0x194   : > { %v924_v47 = vpop.permute.xlu1 %923  ;;  %v3379_v48 = vpop.permute.xlu0 %808 }
 0x195   : > { %v933_v50 = vmul.f32 %v924_v47, %v686_v32  ;;  %v3381_v52 = vmul.f32 %v924_v47, %v796_v37  ;;  %v817_v53 = vmul.f32 %v3379_v48, %v687_v45  ;;  %v4024_v47 = vsub.s32 1, %v3314_v51 }
 0x197   : > { %2608 = vmatmul.mubr.msk.f32.gmra.mrb[2].mxu0 %vm582_vm0, %v817_v53  ;;  %2629 = vmatprep.mubr.msk.f32.mxu1 %vm582_vm0, %v933_v50  ;;  %v579_v5 = vrot.slane %v3332_v56, %v4024_v47 }
 0x198   : > { %v3386_v57 = vpop.permute.xlu1 %925 }
 0x199   : > { %v934_v58 = vmul.f32 %v3386_v57, %v687_v45  ;;  %v3436_v11 = vadd.f32 %v3340_v63, %v579_v5 }
 0x19b   : > { %2630 = vmatmul.mubr.msk.f32.gmra.mrb[18].mxu1 %vm582_vm0, %v934_v58 }
 0x19c   : > { %1370 = vmatprep.mubr.f32.mxu1 %v4026_v15 }
 0x256   : > { %v2606_v13 = vpop.f32.mrb[0].mxu0 }
 0x257   : > { %v896_v16 = vpop.f32.mrb[1].mxu0 }
 0x266   : > { %v2628_v19 = vpop.f32.mrb[16].mxu1 }
 0x267   : > { %v1033_v20 = vmax.f32 %v2606_v13, %v2628_v19  ;;  %v1013_v21 = vpop.f32.mrb[17].mxu1 }
 0x268   : > { %v1032_v23 = vmax.f32 %v896_v16, %v1013_v21 }
 0x269   : > { %v1037_v24 = vsub.f32 %v2606_v13, %v1033_v20  ;;  %v1049_v25 = vsub.f32 %v2628_v19, %v1033_v20  ;;  %v3442_v20 = vadd.f32 %v3337_v60, %v579_v5 }
 0x26a   : > { %v1036_v26 = vsub.f32 %v896_v16, %v1032_v23  ;;  %v1048_v27 = vsub.f32 %v1013_v21, %v1032_v23  ;;  %v2609_v29 = vpop.f32.mrb[2].mxu0  ;;  %v3439_v16 = vadd.f32 %v3350_v10, %v579_v5  ;;  %v3446_v23 = vadd.f32 %v3347_v6, %v579_v5 }
 0x26b   : > { %v1042_v30 = vmul.f32 1.442695, %v1037_v24  ;;  %v1054_v32 = vmul.f32 1.442695, %v1049_v25  ;;  %v906_v37 = vpop.f32.mrb[3].mxu0  ;;  %v3455_v6 = vadd.f32 %v3360_v18, %v579_v5 }
 0x26c   : > { %v1040_v38 = vmul.f32 1.442695, %v1036_v26  ;;  %v1052_v39 = vmul.f32 1.442695, %v1048_v27 }
 0x26d   : > { %2970 = vpow2.f32 %v1042_v30  ;;  %v3452_v30 = vadd.f32 %v3345_v3, %v579_v5 }
 0x26e   : > { %2972 = vpow2.f32 %v1054_v32  ;;  %v2631_v40 = vpop.f32.mrb[18].mxu1 }
 0x26f   : > { %2974 = vpow2.f32 %v1040_v38  ;;  %v1035_v42 = vmax.f32 %v2609_v29, %v2631_v40  ;;  %v1023_v45 = vpop.f32.mrb[19].mxu1  ;;  %v3458_v38 = vadd.f32 %v3343_v1, %v579_v5 }
 0x270   : > { %2976 = vpow2.f32 %v1052_v39  ;;  %v1034_v50 = vmax.f32 %v906_v37, %v1023_v45 }
 0x271   : > { %v1039_v53 = vsub.f32 %v2609_v29, %v1035_v42  ;;  %v1051_v58 = vsub.f32 %v2631_v40, %v1035_v42  ;;  %v3462_v42 = vadd.f32 %v3354_v14, %v579_v5 }
 0x272   : > { %v1038_v59 = vsub.f32 %v906_v37, %v1034_v50  ;;  %v1050_v61 = vsub.f32 %v1023_v45, %v1034_v50 }
 0x273   : > { %v1046_v0 = vmul.f32 1.442695, %v1039_v53  ;;  %v1058_v2 = vmul.f32 1.442695, %v1051_v58 }
 0x274   : > { %v1044_v7 = vmul.f32 1.442695, %v1038_v59  ;;  %v1056_v9 = vmul.f32 1.442695, %v1050_v61 }
 0x275   : > { %2978 = vpow2.f32 %v1046_v0 }
 0x276   : > { %2980 = vpow2.f32 %v1058_v2 }
 0x277   : > { %v2971_v13 = vpop.eup %2970  ;;  %2982 = vpow2.f32 %v1044_v7 }
 0x278   : > { %v2973_v19 = vpop.eup %2972  ;;  %v1065_v21 = vmul.f32 %v2971_v13, %v3436_v11  ;;  %2984 = vpow2.f32 %v1056_v9 }
 0x279   : > { %v2975_v56 = vpop.eup %2974  ;;  %v1061_v24 = vadd.f32 %v2973_v19, %v2971_v13  ;;  %v1069_v63 = vmul.f32 %v2973_v19, %v3439_v16  ;;  %v3474_v19 = vld [vmem:[%s4014_s5] ss:$0 sm:$0xff] }
 0x27a   : > { %v2977_v25 = vpop.eup %2976  ;;  %v1064_v26 = vmul.f32 %v2975_v56, %v3442_v20  ;;  %4031 = vst [vmem:[#allocation3_spill] sm:$0xff] %v3474_v19 }
 0x27b   : > { %v1073_v10 = vadd.f32 %v1069_v63, %v1065_v21  ;;  %2986 = vrcp.f32 %v1061_v24  ;;  %v1060_v27 = vadd.f32 %v2977_v25, %v2975_v56  ;;  %v1068_v29 = vmul.f32 %v2977_v25, %v3446_v23 }
 0x27d   : > { %2988 = vrcp.f32 %v1060_v27  ;;  %v1072_v60 = vadd.f32 %v1068_v29, %v1064_v26 }
 0x27f   : > { %v2979_v32 = vpop.eup %2978 }
 0x280   : > { %v2981_v37 = vpop.eup %2980  ;;  %v1067_v39 = vmul.f32 %v2979_v32, %v3452_v30 }
 0x281   : > { %v2983_v40 = vpop.eup %2982  ;;  %v1063_v45 = vadd.f32 %v2981_v37, %v2979_v32  ;;  %v1071_v50 = vmul.f32 %v2981_v37, %v3455_v6 }
 0x282   : > { %v2985_v53 = vpop.eup %2984  ;;  %v1066_v3 = vmul.f32 %v2983_v40, %v3458_v38 }
 0x283   : > { %2990 = vrcp.f32 %v1063_v45  ;;  %v1062_v58 = vadd.f32 %v2985_v53, %v2983_v40  ;;  %v1070_v18 = vmul.f32 %v2985_v53, %v3462_v42  ;;  %v1075_v59 = vadd.f32 %v1071_v50, %v1067_v39 }
 0x285   : > { %v2987_v61 = vpop.eup %2986  ;;  %2992 = vrcp.f32 %v1062_v58  ;;  %v1074_v1 = vadd.f32 %v1070_v18, %v1066_v3 }
 0x286   : > { %v1079_v0 = vmul.f32 %v2987_v61, %v1073_v10 }
 0x287   : > { %v2989_v2 = vpop.eup %2988 }
 0x288   : > { %v1077_v7 = vmul.f32 %v2989_v2, %v1072_v60 }
 0x28a   : > { %2648 = vmatprep.mubr.msk.f32.mxu0 %vm582_vm0, %v1077_v7 }
 0x28b   : > { %2649 = vmatmul.mubr.msk.f32.vlgmr.msra.gmra.mrb[4].mxu0 %vm582_vm0, %v1079_v0 }
 0x28d   : > { %v2991_v14 = vpop.eup %2990 }
 0x28e   : > { %v1083_v5 = vmul.f32 %v2991_v14, %v1075_v59 }
 0x28f   : > { %v2993_v9 = vpop.eup %2992 }
 0x290   : > { %v1081_v13 = vmul.f32 %v2993_v9, %v1074_v1 }
 0x292   : > { %2651 = vmatprep.mubr.msk.f32.mxu0 %vm582_vm0, %v1081_v13 }
 0x293   : > { %2652 = vmatmul.mubr.msk.f32.gmra.mrb[6].mxu0 %vm582_vm0, %v1083_v5 }
 0x35e   : > { %v2650_v21 = vpop.f32.mrb[4].mxu0 }
 0x35f   : > { %v1174_v56 = vadd.f32 %v2650_v21, %v3474_v19  ;;  %v1168_v24 = vpop.f32.mrb[5].mxu0 }
 0x360   : > { %v1169_v63 = vadd.f32 %v3474_v19, %v1168_v24  ;;  %v1267_v24 = vld [vmem:[%s4017_s8 + $0x8] sm:$0xff] }
 0x361   : > { %v1188_v25 = vadd.f32 %v1174_v56, %v3250_v34 }
 0x362   : > { %v1187_v26 = vadd.f32 %v1169_v63, %v3244_v33  ;;  %v1269_v63 = vld [vmem:[%s4017_s8 + $0x18] sm:$0xff] }
 0x363   : > { %v1196_v10 = vsel %vm582_vm0, %v1188_v25, 0.0 }
 0x364   : > { %1197 = vadd.xlane.f32.xlu1 %v1196_v10  ;;  %v1193_v27 = vsel %vm582_vm0, %v1187_v26, 0.0  ;;  %v1268_v10 = vld [vmem:[%s4017_s8 + $0x10] sm:$0xff] }
 0x365   : > { %1194 = vadd.xlane.f32.xlu0 %v1193_v27 }
 0x366   : > { %v2653_v29 = vpop.f32.mrb[6].mxu0 }
 0x367   : > { %v1178_v60 = vpop.f32.mrb[7].mxu0  ;;  %v1184_v32 = vadd.f32 %v2653_v29, %v3474_v19  ;;  %v1271_v29 = vld [vmem:[%s4017_s8 + $0x28] sm:$0xff] }
 0x368   : > { %v1179_v37 = vadd.f32 %v3474_v19, %v1178_v60  ;;  %v1273_v60 = vld [vmem:[%s4017_s8 + $0x38] sm:$0xff] }
 0x369   : > { %v1190_v34 = vadd.f32 %v1184_v32, %v3262_v36  ;;  %v3532_v32 = vpack.c.bf16 %v1273_v60, %v1271_v29  ;;  %v1406_v29 = vld [vmem:[%s4019_s10 + $0x18] sm:$0xff]  ;;  %v1423_v60 = vld [vmem:[%s4019_s10 + $0xa0] sm:$0xff] }
 0x36a   : > { %v1189_v39 = vadd.f32 %v1179_v37, %v3256_v35  ;;  %v1270_v37 = vld [vmem:[%s4017_s8 + $0x20] sm:$0xff] }
 0x36b   : > { %v1202_v33 = vsel %vm582_vm0, %v1190_v34, 0.0 }
 0x36c   : > { %v1199_v40 = vsel %vm582_vm0, %v1189_v39, 0.0 }
 0x36d   : > { %1200 = vadd.xlane.f32.xlu0 %v1199_v40 }
 0x371   : > { %1203 = vadd.xlane.f32.xlu0 %v1202_v33  ;;  %v1277_v33 = vld [vmem:[%s4017_s8 + $0x58] sm:$0xff] }
 0x3f1   : > { %v1198_v45 = vpop.xlane.xlu1 %1197 }
 0x3f2   : > { %v1207_v50 = vmul.f32 0.015625, %v1198_v45  ;;  %v1195_v53 = vpop.xlane.xlu0 %1194 }
 0x3f3   : > { %v1206_v3 = vmul.f32 0.015625, %v1195_v53  ;;  %v1276_v53 = vld [vmem:[%s4017_s8 + $0x50] sm:$0xff] }
 0x3f4   : > { %v3488_v58 = vsub.f32 %v1188_v25, %v1207_v50  ;;  %v3514_v25 = vpack.c.bf16 %v1269_v63, %v1267_v24  ;;  %v1274_v50 = vld [vmem:[%s4017_s8 + $0x40] sm:$0xff]  ;;  %v1422_v24 = vld [vmem:[%s4019_s10 + $0x98] sm:$0xff] }
 0x3f5   : > { %v3490_v18 = vsub.f32 %v1187_v26, %v1206_v3  ;;  %v1266_v26 = vld [vmem:[%s4017_s8] sm:$0xff]  ;;  %v3558_v3 = vpack.c.bf16 %v1276_v53, %v1274_v50  ;;  %v1408_v50 = vld [vmem:[%s4019_s10 + $0x28] sm:$0xff]  ;;  %v1425_v53 = vld [vmem:[%s4019_s10 + $0xb0] sm:$0xff] }
 0x3f6   : > { %v1215_v59 = vmul.f32 %v3488_v58, %v3488_v58  ;;  %v3522_v27 = vpack.c.bf16 %v1268_v10, %v1266_v26  ;;  %2801 = vmatprep.subr.bf16.mxu1 %v3514_v25  ;;  %v1405_v10 = vld [vmem:[%s4019_s10 + $0x10] sm:$0xff] }
 0x3f7   : > { %v1214_v35 = vmul.f32 %v3490_v18, %v3490_v18 }
 0x3f8   : > { %v1221_v36 = vsel %vm582_vm0, %v1215_v59, 0.0  ;;  %2803 = vmatpush1.bf16.msra.mxu1 %v3522_v27  ;;  %v1279_v59 = vld [vmem:[%s4017_s8 + $0x68] sm:$0xff] }
 0x3f9   : > { %1222 = vadd.xlane.f32.xlu0 %v1221_v36  ;;  %v1218_v61 = vsel %vm582_vm0, %v1214_v35, 0.0  ;;  %2805 = vmatprep.subr.bf16.mxu1 %v3532_v32  ;;  %v1281_v35 = vld [vmem:[%s4017_s8 + $0x78] sm:$0xff] }
 0x3fa   : > { %1219 = vadd.xlane.f32.xlu1 %v1218_v61  ;;  %v1201_v1 = vpop.xlane.xlu0 %1200  ;;  %v3568_v36 = vpack.c.bf16 %v1281_v35, %v1279_v59  ;;  %v1278_v61 = vld [vmem:[%s4017_s8 + $0x60] sm:$0xff]  ;;  %v1426_v59 = vld [vmem:[%s4019_s10 + $0xb8] sm:$0xff] }
 0x3fb   : > { %v1208_v0 = vmul.f32 0.015625, %v1201_v1  ;;  %v1280_v1 = vld [vmem:[%s4017_s8 + $0x70] sm:$0xff] }
 0x3fd   : > { %v3498_v2 = vsub.f32 %v1189_v39, %v1208_v0  ;;  %v1272_v39 = vld [vmem:[%s4017_s8 + $0x30] sm:$0xff]  ;;  %v3576_v0 = vpack.c.bf16 %v1280_v1, %v1278_v61  ;;  %v3640_v61 = vpack.c.bf16 %v1426_v59, %v1425_v53  ;;  %v1414_v53 = vld [vmem:[%s4019_s10 + $0x58] sm:$0xff]  ;;  %v1431_v59 = vld [vmem:[%s4019_s10 + $0xe0] sm:$0xff] }
 0x3fe   : > { %v1204_v7 = vpop.xlane.xlu0 %1203  ;;  %v3540_v40 = vpack.c.bf16 %v1272_v39, %v1270_v37  ;;  %v1424_v37 = vld [vmem:[%s4019_s10 + $0xa8] sm:$0xff]  ;;  %v3619_v39 = vpack.c.bf16 %v1406_v29, %v1405_v10  ;;  %v1409_v1 = vld [vmem:[%s4019_s10 + $0x30] sm:$0xff] }
 0x3ff   : > { %v1209_v14 = vmul.f32 0.015625, %v1204_v7  ;;  %v1216_v5 = vmul.f32 %v3498_v2, %v3498_v2  ;;  %v1419_v7 = vld [vmem:[%s4019_s10 + $0x80] sm:$0xff]  ;;  %v1412_v10 = vld [vmem:[%s4019_s10 + $0x48] sm:$0xff]  ;;  %v1429_v29 = vld [vmem:[%s4019_s10 + $0xd0] sm:$0xff] }
 0x400   : > { %2807 = vmatpush1.bf16.msra.mxu1 %v3540_v40 }
 0x401   : > { %v3502_v9 = vsub.f32 %v1190_v34, %v1209_v14  ;;  %v1224_v13 = vsel %vm582_vm0, %v1216_v5, 0.0  ;;  %v1275_v34 = vld [vmem:[%s4017_s8 + $0x48] sm:$0xff]  ;;  %v1403_v5 = vld [vmem:[%s4019_s10] sm:$0xff] }
 0x402   : > { %1225 = vadd.xlane.f32.xlu1 %v1224_v13  ;;  %v3550_v45 = vpack.c.bf16 %v1277_v33, %v1275_v34  ;;  %v1420_v14 = vld [vmem:[%s4019_s10 + $0x88] sm:$0xff]  ;;  %v3622_v34 = vpack.c.bf16 %v1424_v37, %v1423_v60  ;;  %v1407_v33 = vld [vmem:[%s4019_s10 + $0x20] sm:$0xff]  ;;  %v1430_v60 = vld [vmem:[%s4019_s10 + $0xd8] sm:$0xff] }
 0x403   : > { %v1217_v21 = vmul.f32 %v3502_v9, %v3502_v9  ;;  %v3590_v13 = vpack.c.bf16 %v1420_v14, %v1419_v7  ;;  %v3637_v35 = vpack.c.bf16 %v1408_v50, %v1407_v33  ;;  %v1410_v7 = vld [vmem:[%s4019_s10 + $0x38] sm:$0xff]  ;;  %v1427_v14 = vld [vmem:[%s4019_s10 + $0xc0] sm:$0xff]  ;;  %v3676_v33 = vpack.c.bf16 %v1430_v60, %v1429_v29  ;;  %v1413_v50 = vld [vmem:[%s4019_s10 + $0x50] sm:$0xff] }
 0x404   : > { %2809 = vmatprep.subr.bf16.mxu1 %v3550_v45 }
 0x405   : > { %v1227_v56 = vsel %vm582_vm0, %v1217_v21, 0.0  ;;  %2811 = vmatpush1.bf16.msra.mxu1 %v3558_v3  ;;  %v1404_v21 = vld [vmem:[%s4019_s10 + $0x8] sm:$0xff]  ;;  %2817 = vmatprep.subr.bf16.mxu0 %v3590_v13 }
 0x406   : > { %1228 = vadd.xlane.f32.xlu0 %v1227_v56  ;;  %2813 = vmatprep.subr.bf16.mxu1 %v3568_v36  ;;  %v1421_v56 = vld [vmem:[%s4019_s10 + $0x90] sm:$0xff]  ;;  %v3601_v63 = vpack.c.bf16 %v1404_v21, %v1403_v5  ;;  %v1428_v5 = vld [vmem:[%s4019_s10 + $0xc8] sm:$0xff]  ;;  %v3655_v21 = vpack.c.bf16 %v1410_v7, %v1409_v1  ;;  %v3691_v7 = vpack.c.bf16 %v1414_v53, %v1413_v50 }
 0x407   : > { %v3603_v26 = vpack.c.bf16 %v1422_v24, %v1421_v56  ;;  %v3658_v56 = vpack.c.bf16 %v1428_v5, %v1427_v14  ;;  %v1411_v24 = vld [vmem:[%s4019_s10 + $0x40] sm:$0xff]  ;;  %v1432_v1 = vld [vmem:[%s4019_s10 + $0xe8] sm:$0xff] }
 0x408   : > { %2819 = vmatpush3.bf16.msra.mxu0 %v3601_v63  ;;  %v3673_v37 = vpack.c.bf16 %v1412_v10, %v1411_v24  ;;  %v3694_v14 = vpack.c.bf16 %v1432_v1, %v1431_v59 }
 0x409   : > { %2815 = vmatpush1.bf16.msra.mxu1 %v3576_v0  ;;  %2821 = vmatprep.subr.bf16.mxu0 %v3603_v26 }
 0x40a   : > { %2849 = vmatprep.subr.bf16.mxu1 %v3287_v44  ;;  %4032 = vst [vmem:[#allocation4_spill] sm:$0xff] %v3694_v14 }
 0x40c   : > { %2823 = vmatpush3.bf16.msra.mxu0 %v3619_v39 }
 0x40d   : > { %2825 = vmatprep.subr.bf16.mxu0 %v3622_v34 }
 0x410   : > { %2827 = vmatpush3.bf16.msra.mxu0 %v3637_v35 }
 0x411   : > { %2829 = vmatprep.subr.bf16.mxu0 %v3640_v61 }
 0x414   : > { %2831 = vmatpush3.bf16.msra.mxu0 %v3655_v21 }
 0x415   : > { %2833 = vmatprep.subr.bf16.mxu0 %v3658_v56 }
 0x418   : > { %2835 = vmatpush3.bf16.msra.mxu0 %v3673_v37 }
 0x419   : > { %2837 = vmatprep.subr.bf16.mxu0 %v3676_v33 }
 0x41c   : > { %2839 = vmatpush3.bf16.msra.mxu0 %v3691_v7 }
 0x41d   : > { %2841 = vmatprep.subr.bf16.mxu0 %v3694_v14  ;;  %v3701_v14 = vld [vmem:[%s4015_s6] ss:$0 sm:$0xff] }
 0x486   : > { %v1223_v5 = vpop.xlane.xlu0 %1222 }
 0x487   : > { %v1231_v24 = vmul.f32 0.015625, %v1223_v5  ;;  %v1220_v10 = vpop.xlane.xlu1 %1219 }
 0x488   : > { %v1230_v29 = vmul.f32 0.015625, %v1220_v10 }
 0x489   : > { %v1235_v60 = vadd.f32 1e-05, %v1231_v24 }
 0x48a   : > { %v1234_v47 = vadd.f32 1e-05, %v1230_v29 }
 0x48b   : > { %2994 = vrsqrt.f32 %v1235_v60 }
 0x48c   : > { %2996 = vrsqrt.f32 %v1234_v47 }
 0x48f   : > { %v1226_v55 = vpop.xlane.xlu1 %1225 }
 0x490   : > { %v1232_v15 = vmul.f32 0.015625, %v1226_v55  ;;  %v3708_v55 = vld [vmem:[%s4016_s7] ss:$0 sm:$0xff] }
 0x492   : > { %v1236_v50 = vadd.f32 1e-05, %v1232_v15 }
 0x493   : > { %v1229_v53 = vpop.xlane.xlu0 %1228 }
 0x494   : > { %2998 = vrsqrt.f32 %v1236_v50  ;;  %v1233_v19 = vmul.f32 0.015625, %v1229_v53 }
 0x495   : > { %v2995_v59 = vpop.eup %2994 }
 0x496   : > { %v2997_v1 = vpop.eup %2996  ;;  %v1237_v5 = vadd.f32 1e-05, %v1233_v19  ;;  %v1243_v24 = vmul.f32 %v2995_v59, %v3488_v58  ;;  %v4033_v58 = vmov 0.0  }
 0x497   : > { %v1242_v10 = vmul.f32 %v2997_v1, %v3490_v18 }
 0x498   : > { %3000 = vrsqrt.f32 %v1237_v5  ;;  %v1253_v29 = vmul.f32 %v3701_v14, %v1243_v24 }
 0x499   : > { %v1252_v15 = vmul.f32 %v3701_v14, %v1242_v10 }
 0x49a   : > { %v3721_v18 = vadd.f32 %v3708_v55, %v1253_v29 }
 0x49b   : > { %v3712_v47 = vadd.f32 %v3708_v55, %v1252_v15 }
 0x49d   : > { %2402 = vmatmul.mubr.msk.f32.vlgmr.msra.gmra.mrb[20].mxu1 %vm582_vm0, %v3712_v47 }
 0x49e   : > { %v2999_v19 = vpop.eup %2998  ;;  %2851 = vmatpush3.bf16.msra.mxu1 %v3287_v44  ;;  %1376 = vmatprep.mubr.f32.mxu1 %v4033_v58 }
 0x49f   : > { %2853 = vmatprep.subr.bf16.mxu1 %v3292_v46  ;;  %v1244_v60 = vmul.f32 %v2999_v19, %v3498_v2 }
 0x4a1   : > { %2403 = vmatmul.mubr.msk.f32.gmra.mrb[22].mxu1 %vm582_vm0, %v3721_v18  ;;  %v1254_v50 = vmul.f32 %v3701_v14, %v1244_v60 }
 0x4a2   : > { %v3001_v53 = vpop.eup %3000  ;;  %2855 = vmatpush3.bf16.msra.mxu1 %v3292_v46  ;;  %1382 = vmatprep.mubr.f32.mxu1 %v4033_v58 }
 0x4a3   : > { %2857 = vmatprep.subr.bf16.mxu1 %v3305_v49  ;;  %v3731_v59 = vadd.f32 %v3708_v55, %v1254_v50  ;;  %v1245_v1 = vmul.f32 %v3001_v53, %v3502_v9  ;;  %v797_v9 = vmul.f32 0.35355338, %v3358_v17  ;;  %v1433_v17 = vld [vmem:[%s4019_s10 + $0xf0] sm:$0xff] }
 0x4a5   : > { %2404 = vmatmul.mubr.msk.f32.gmra.mrb[24].mxu1 %vm582_vm0, %v3731_v59  ;;  %v1255_v2 = vmul.f32 %v3701_v14, %v1245_v1  ;;  %v1608_v10 = vmul.f32 %v3379_v48, %v797_v9  ;;  %v1282_v48 = vld [vmem:[%s4018_s9] sm:$0x3] }
 0x4a6   : > { %2859 = vmatpush3.bf16.msra.mxu1 %v3305_v49  ;;  %1388 = vmatprep.mubr.f32.mxu1 %v4033_v58 }
 0x4a7   : > { %2861 = vmatprep.subr.bf16.mxu1 %v3322_v54  ;;  %v3741_v5 = vadd.f32 %v3708_v55, %v1255_v2 }
 0x4a9   : > { %2405 = vmatmul.mubr.msk.f32.gmra.mrb[26].mxu1 %vm582_vm0, %v3741_v5 }
 0x4aa   : > { %2863 = vmatpush3.bf16.msra.mxu1 %v3322_v54  ;;  %2670 = vmatprep.mubr.msk.f32.mxu1 %vm582_vm0, %v3364_v22  ;;  %v1434_v22 = vld [vmem:[%s4019_s10 + $0xf8] sm:$0xff] }
 0x4ab   : > { %2865 = vmatprep.subr.bf16.mxu1 %v3287_v44 }
 0x4ad   : > { %2671 = vmatmul.mubr.msk.f32.vlgmr.msra.gmra.mrb[28].mxu1 %vm582_vm0, %v3367_v28  ;;  %v3795_v28 = vpack.c.bf16 %v1434_v22, %v1433_v17 }
 0x4ae   : > { %2867 = vmatpush3.bf16.msra.mxu1 %v3287_v44  ;;  %2673 = vmatprep.mubr.msk.f32.mxu1 %vm582_vm0, %v3375_v43  ;;  %v1709_v44 = vmul.f32 %v3386_v57, %v797_v9 }
 0x4af   : > { %2869 = vmatprep.subr.bf16.mxu1 %v3292_v46 }
 0x4b1   : > { %2674 = vmatmul.mubr.msk.f32.gmra.mrb[30].mxu1 %vm582_vm0, %v1608_v10 }
 0x4b2   : > { %2871 = vmatpush3.bf16.msra.mxu1 %v3292_v46  ;;  %2692 = vmatprep.mubr.msk.f32.mxu1 %vm582_vm0, %v3370_v31  ;;  %v1415_v46 = vld [vmem:[%s4019_s10 + $0x60] sm:$0xff]  ;;  %v1417_v31 = vld [vmem:[%s4019_s10 + $0x70] sm:$0xff] }
 0x4b3   : > { %2873 = vmatprep.subr.bf16.mxu1 %v3305_v49 }
 0x4b6   : > { %2875 = vmatpush3.bf16.msra.mxu1 %v3305_v49  ;;  %v1416_v49 = vld [vmem:[%s4019_s10 + $0x68] sm:$0xff] }
 0x4b7   : > { %2877 = vmatprep.subr.bf16.mxu1 %v3322_v54 }
 0x4ba   : > { %2879 = vmatpush3.bf16.msra.mxu1 %v3322_v54  ;;  %v3786_v54 = vpack.c.bf16 %v1416_v49, %v1415_v46 }
 0x4bb   : > { %2897 = vmatprep.subr.bf16.mxu1 %v3514_v25  ;;  %v4035_v25 = vsub.s32 1, %v3314_v51 }
 0x4bc   : > { %2843 = vmatpush3.bf16.msra.mxu0 %v3786_v54 }
 0x4bd   : > { %2693 = vmatmul.mubr.msk.f32.vlgmr.msra.gmra.mrb[32].mxu1 %vm582_vm0, %v3373_v41  ;;  %v1418_v41 = vld [vmem:[%s4019_s10 + $0x78] sm:$0xff]  ;;  %2845 = vmatprep.subr.bf16.mxu0 %v3795_v28 }
 0x4be   : > { %2695 = vmatprep.mubr.msk.f32.mxu1 %vm582_vm0, %v3381_v52  ;;  %2899 = vmatpush1.bf16.msra.mxu1 %v3522_v27  ;;  %v3803_v43 = vpack.c.bf16 %v1418_v41, %v1417_v31  ;;  %v4034_v52 = vsub.s32 0, %v3314_v51  ;;  %v3817_v27 = vrot.slane %v1282_v48, %v4035_v25 }
 0x4bf   : > { %2901 = vmatprep.subr.bf16.mxu1 %v3532_v32 }
 0x4c0   : > { %2847 = vmatpush3.bf16.msra.mxu0 %v3803_v43  ;;  %v3813_v57 = vrot.slane %v1282_v48, %v4034_v52 }
 0x4c1   : > { %2696 = vmatmul.mubr.msk.f32.gmra.mrb[34].mxu1 %vm582_vm0, %v1709_v44  ;;  %2881 = vmatprep.subr.bf16.mxu0 %v3397_v62 }
 0x4c2   : > { %2903 = vmatpush1.bf16.msra.mxu1 %v3540_v40  ;;  %2096 = vmatprep.mubr.f32.mxu1 %v4033_v58 }
 0x4c3   : > { %2905 = vmatprep.subr.bf16.mxu1 %v3550_v45 }
 0x4c6   : > { %2907 = vmatpush1.bf16.msra.mxu1 %v3558_v3 }
 0x4c7   : > { %2909 = vmatprep.subr.bf16.mxu1 %v3568_v36 }
 0x4ca   : > { %2911 = vmatpush1.bf16.msra.mxu1 %v3576_v0 }
 0x570   : > { %v1372_v32 = vpop.f32.mrb[20].mxu1 }
 0x571   : > { %v1373_v40 = vadd.f32 %v1372_v32, %v3813_v57  ;;  %v1374_v45 = vpop.f32.mrb[21].mxu1 }
 0x572   : > { %v1375_v3 = vadd.f32 %v1374_v45, %v3817_v27 }
 0x573   : > { %v1395_v24 = vmax.f32 %v1373_v40, 0.0 }
 0x574   : > { %v1396_v36 = vmax.f32 %v1375_v3, 0.0  ;;  %v1378_v0 = vpop.f32.mrb[22].mxu1 }
 0x575   : > { %v1379_v15 = vadd.f32 %v1378_v0, %v3813_v57  ;;  %v1380_v29 = vpop.f32.mrb[23].mxu1 }
 0x576   : > { %v1381_v19 = vadd.f32 %v1380_v29, %v3817_v27  ;;  %1506 = vmatprep.mubr.f32.mxu0 %v1396_v36 }
 0x577   : > { %1507 = vmatmul.mubr.f32.vlgmr.msra.gmra.mrb[8].mxu0 %v1395_v24  ;;  %v1397_v50 = vmax.f32 %v1379_v15, 0.0 }
 0x578   : > { %v1398_v60 = vmax.f32 %v1381_v19, 0.0  ;;  %v1384_v51 = vpop.f32.mrb[24].mxu1  ;;  %2883 = vmatpush3.bf16.msra.mxu0 %v3397_v62 }
 0x579   : > { %v1385_v53 = vadd.f32 %v1384_v51, %v3813_v57  ;;  %v1386_v1 = vpop.f32.mrb[25].mxu1  ;;  %2885 = vmatprep.subr.bf16.mxu0 %v3407_v4 }
 0x57a   : > { %v1387_v2 = vadd.f32 %v1386_v1, %v3817_v27  ;;  %1511 = vmatprep.mubr.f32.mxu0 %v1398_v60 }
 0x57b   : > { %1512 = vmatmul.mubr.f32.gmra.mrb[10].mxu0 %v1397_v50  ;;  %v1399_v44 = vmax.f32 %v1385_v53, 0.0 }
 0x57c   : > { %v1400_v9 = vmax.f32 %v1387_v2, 0.0  ;;  %v1390_v10 = vpop.f32.mrb[26].mxu1  ;;  %2887 = vmatpush3.bf16.msra.mxu0 %v3407_v4 }
 0x57d   : > { %v1391_v46 = vadd.f32 %v1390_v10, %v3813_v57  ;;  %v1392_v49 = vpop.f32.mrb[27].mxu1  ;;  %2889 = vmatprep.subr.bf16.mxu0 %v3417_v8 }
 0x57e   : > { %v1393_v62 = vadd.f32 %v1392_v49, %v3817_v27  ;;  %1516 = vmatprep.mubr.f32.mxu0 %v1400_v9 }
 0x57f   : > { %1517 = vmatmul.mubr.f32.gmra.mrb[12].mxu0 %v1399_v44  ;;  %v1401_v31 = vmax.f32 %v1391_v46, 0.0 }
 0x580   : > { %v1402_v17 = vmax.f32 %v1393_v62, 0.0  ;;  %v2672_v22 = vpop.f32.mrb[28].mxu1  ;;  %2891 = vmatpush3.bf16.msra.mxu0 %v3417_v8 }
 0x581   : > { %v1687_v41 = vpop.f32.mrb[29].mxu1  ;;  %2893 = vmatprep.subr.bf16.mxu0 %v3427_v12 }
 0x582   : > { %1521 = vmatprep.mubr.f32.mxu0 %v1402_v17 }
 0x583   : > { %1522 = vmatmul.mubr.f32.gmra.mrb[14].mxu0 %v1401_v31 }
 0x584   : > { %v2675_v4 = vpop.f32.mrb[30].mxu1  ;;  %2895 = vmatpush3.bf16.msra.mxu0 %v3427_v12 }
 0x585   : > { %v1697_v48 = vpop.f32.mrb[31].mxu1  ;;  %2913 = vmatprep.subr.bf16.mxu0 %v3590_v13 }
 0x590   : > { %v2694_v52 = vpop.f32.mrb[32].mxu1 }
 0x591   : > { %v1808_v25 = vmax.f32 %v2672_v22, %v2694_v52  ;;  %v1788_v32 = vpop.f32.mrb[33].mxu1 }
 0x592   : > { %v1807_v40 = vmax.f32 %v1687_v41, %v1788_v32 }
 0x593   : > { %v1812_v45 = vsub.f32 %v2672_v22, %v1808_v25  ;;  %v1824_v3 = vsub.f32 %v2694_v52, %v1808_v25 }
 0x594   : > { %v1811_v36 = vsub.f32 %v1687_v41, %v1807_v40  ;;  %v1823_v8 = vsub.f32 %v1788_v32, %v1807_v40  ;;  %v2697_v0 = vpop.f32.mrb[34].mxu1 }
 0x595   : > { %v1817_v24 = vmul.f32 1.442695, %v1812_v45  ;;  %v1829_v15 = vmul.f32 1.442695, %v1824_v3  ;;  %v1810_v29 = vmax.f32 %v2675_v4, %v2697_v0  ;;  %v1798_v19 = vpop.f32.mrb[35].mxu1 }
 0x596   : > { %v1815_v60 = vmul.f32 1.442695, %v1811_v36  ;;  %v1827_v51 = vmul.f32 1.442695, %v1823_v8  ;;  %v1809_v50 = vmax.f32 %v1697_v48, %v1798_v19 }
 0x597   : > { %3002 = vpow2.f32 %v1817_v24  ;;  %v1814_v12 = vsub.f32 %v2675_v4, %v1810_v29  ;;  %v1826_v53 = vsub.f32 %v2697_v0, %v1810_v29 }
 0x598   : > { %3004 = vpow2.f32 %v1829_v15  ;;  %v1813_v13 = vsub.f32 %v1697_v48, %v1809_v50  ;;  %v1825_v1 = vsub.f32 %v1798_v19, %v1809_v50 }
 0x599   : > { %3006 = vpow2.f32 %v1815_v60  ;;  %v1821_v2 = vmul.f32 1.442695, %v1814_v12  ;;  %v1833_v9 = vmul.f32 1.442695, %v1826_v53 }
 0x59a   : > { %3008 = vpow2.f32 %v1827_v51  ;;  %v1819_v10 = vmul.f32 1.442695, %v1813_v13  ;;  %v1831_v44 = vmul.f32 1.442695, %v1825_v1  ;;  %v3050_v1 = vld [vmem:[%s3241_s18 + $0x28] sm:$0xff] }
 0x59b   : > { %3010 = vpow2.f32 %v1821_v2 }
 0x59c   : > { %3012 = vpow2.f32 %v1833_v9 }
 0x59d   : > { %3014 = vpow2.f32 %v1819_v10  ;;  %v3051_v10 = vld [vmem:[%s3241_s18 + $0x20] sm:$0xff] }
 0x59e   : > { %3016 = vpow2.f32 %v1831_v44 }
 0x5a1   : > { %v3003_v46 = vpop.eup %3002 }
 0x5a2   : > { %v3005_v49 = vpop.eup %3004  ;;  %v1840_v62 = vmul.f32 %v3003_v46, %v3436_v11 }
 0x5a3   : > { %v3007_v17 = vpop.eup %3006  ;;  %v1836_v22 = vadd.f32 %v3005_v49, %v3003_v46  ;;  %v1844_v31 = vmul.f32 %v3005_v49, %v3439_v16 }
 0x5a4   : > { %v3009_v41 = vpop.eup %3008  ;;  %v1839_v4 = vmul.f32 %v3007_v17, %v3442_v20 }
 0x5a5   : > { %v3011_v48 = vpop.eup %3010  ;;  %v1848_v52 = vadd.f32 %v1844_v31, %v1840_v62  ;;  %3018 = vrcp.f32 %v1836_v22  ;;  %v1835_v25 = vadd.f32 %v3009_v41, %v3007_v17  ;;  %v1843_v32 = vmul.f32 %v3009_v41, %v3446_v23  ;;  %v3052_v31 = vld [vmem:[%s3241_s18 + $0x38] sm:$0xff] }
 0x5a6   : > { %v3013_v40 = vpop.eup %3012  ;;  %v1842_v45 = vmul.f32 %v3011_v48, %v3452_v30 }
 0x5a7   : > { %v3015_v3 = vpop.eup %3014  ;;  %3020 = vrcp.f32 %v1835_v25  ;;  %v1838_v36 = vadd.f32 %v3013_v40, %v3011_v48  ;;  %v1847_v11 = vadd.f32 %v1843_v32, %v1839_v4  ;;  %v1846_v8 = vmul.f32 %v3013_v40, %v3455_v6  ;;  %v3053_v4 = vld [vmem:[%s3241_s18 + $0x30] sm:$0xff]  ;;  %s531_s18 = scalar_lea.vmem %s4023_s14, %s2374_s23 }
 0x5a8   : > { %v3017_v0 = vpop.eup %3016  ;;  %v1841_v16 = vmul.f32 %v3015_v3, %v3458_v38  ;;  %v4036_v38 = vld [vmem:[#allocation4_spill] sm:$0xff] }
 0x5a9   : > { %3022 = vrcp.f32 %v1838_v36  ;;  %v1837_v20 = vadd.f32 %v3017_v0, %v3015_v3  ;;  %v1845_v24 = vmul.f32 %v3017_v0, %v3462_v42  ;;  %v1850_v15 = vadd.f32 %v1846_v8, %v1842_v45 }
 0x5ab   : > { %3024 = vrcp.f32 %v1837_v20  ;;  %v1849_v29 = vadd.f32 %v1845_v24, %v1841_v16 }
 0x5af   : > { %v3019_v23 = vpop.eup %3018 }
 0x5b0   : > { %v1854_v19 = vmul.f32 %v3019_v23, %v1848_v52 }
 0x5b1   : > { %v3021_v60 = vpop.eup %3020 }
 0x5b2   : > { %v1852_v30 = vmul.f32 %v3021_v60, %v1847_v11 }
 0x5b3   : > { %v3023_v51 = vpop.eup %3022 }
 0x5b4   : > { %2714 = vmatprep.mubr.msk.f32.mxu0 %vm582_vm0, %v1852_v30  ;;  %v1858_v50 = vmul.f32 %v3023_v51, %v1850_v15 }
 0x5b5   : > { %v3025_v12 = vpop.eup %3024  ;;  %2715 = vmatmul.mubr.msk.f32.vlgmr.msra.gmra.mrb[16].mxu0 %vm582_vm0, %v1854_v19 }
 0x5b6   : > { %v1856_v6 = vmul.f32 %v3025_v12, %v1849_v29  ;;  %2915 = vmatpush3.bf16.msra.mxu0 %v3601_v63 }
 0x5b7   : > { %2917 = vmatprep.subr.bf16.mxu0 %v3603_v26 }
 0x5b8   : > { %2717 = vmatprep.mubr.msk.f32.mxu0 %vm582_vm0, %v1856_v6 }
 0x5b9   : > { %2718 = vmatmul.mubr.msk.f32.gmra.mrb[18].mxu0 %vm582_vm0, %v1858_v50 }
 0x5ba   : > { %2919 = vmatpush3.bf16.msra.mxu0 %v3619_v39 }
 0x5bb   : > { %2921 = vmatprep.subr.bf16.mxu0 %v3622_v34 }
 0x5be   : > { %2923 = vmatpush3.bf16.msra.mxu0 %v3637_v35 }
 0x5bf   : > { %2925 = vmatprep.subr.bf16.mxu0 %v3640_v61 }
 0x5c2   : > { %2927 = vmatpush3.bf16.msra.mxu0 %v3655_v21 }
 0x5c3   : > { %2929 = vmatprep.subr.bf16.mxu0 %v3658_v56 }
 0x5c6   : > { %2931 = vmatpush3.bf16.msra.mxu0 %v3673_v37 }
 0x5c7   : > { %2933 = vmatprep.subr.bf16.mxu0 %v3676_v33 }
 0x5ca   : > { %2935 = vmatpush3.bf16.msra.mxu0 %v3691_v7 }
 0x5cb   : > { %2937 = vmatprep.subr.bf16.mxu0 %v4036_v38 }
 0x5ce   : > { %2939 = vmatpush3.bf16.msra.mxu0 %v3786_v54 }
 0x5cf   : > { %2941 = vmatprep.subr.bf16.mxu0 %v3795_v28  ;;  %v4037_v28 = vld [vmem:[#allocation3_spill] sm:$0xff] }
 0x5d2   : > { %2943 = vmatpush3.bf16.msra.mxu0 %v3803_v43 }
 0x64a   : > { %v2496_v42 = vpop.f32.mrb[8].mxu0 }
 0x64b   : > { %v2497_v63 = vpop.f32.mrb[9].mxu0 }
 0x64c   : > { %v3862_v26 = vadd.f32 %v2497_v63, %v2496_v42 }
 0x64e   : > { %v2499_v39 = vpop.f32.mrb[10].mxu0 }
 0x64f   : > { %v2500_v34 = vpop.f32.mrb[11].mxu0 }
 0x650   : > { %v3864_v35 = vadd.f32 %v2500_v34, %v2499_v39 }
 0x652   : > { %v2502_v61 = vpop.f32.mrb[12].mxu0 }
 0x653   : > { %v2503_v21 = vpop.f32.mrb[13].mxu0 }
 0x654   : > { %v3866_v56 = vadd.f32 %v2503_v21, %v2502_v61 }
 0x656   : > { %v2505_v37 = vpop.f32.mrb[14].mxu0 }
 0x657   : > { %v2506_v33 = vpop.f32.mrb[15].mxu0 }
 0x658   : > { %v3868_v7 = vadd.f32 %v2506_v33, %v2505_v37 }
 0x688   : > { %v2716_v54 = vpop.f32.mrb[16].mxu0 }
 0x689   : > { %v1943_v43 = vadd.f32 %v2716_v54, %v4037_v28  ;;  %v1937_v53 = vpop.f32.mrb[17].mxu0 }
 0x68a   : > { %v1938_v13 = vadd.f32 %v4037_v28, %v1937_v53 }
 0x68b   : > { %v1957_v2 = vadd.f32 %v3050_v1, %v1943_v43 }
 0x68c   : > { %v2719_v9 = vpop.f32.mrb[18].mxu0  ;;  %v1956_v44 = vadd.f32 %v3051_v10, %v1938_v13 }
 0x68d   : > { %v1953_v46 = vadd.f32 %v2719_v9, %v4037_v28  ;;  %v1947_v49 = vpop.f32.mrb[19].mxu0  ;;  %v1963_v62 = vsel %vm582_vm0, %v1957_v2, 0.0 }
 0x68e   : > { %v1948_v17 = vadd.f32 %v4037_v28, %v1947_v49  ;;  %1964 = vadd.xlane.f32.xlu0 %v1963_v62  ;;  %v1960_v22 = vsel %vm582_vm0, %v1956_v44, 0.0 }
 0x68f   : > { %1961 = vadd.xlane.f32.xlu1 %v1960_v22  ;;  %v1959_v41 = vadd.f32 %v3052_v31, %v1953_v46 }
 0x690   : > { %v1958_v48 = vadd.f32 %v3053_v4, %v1948_v17 }
 0x691   : > { %v1969_v52 = vsel %vm582_vm0, %v1959_v41, 0.0 }
 0x692   : > { %1970 = vadd.xlane.f32.xlu0 %v1969_v52  ;;  %v1966_v25 = vsel %vm582_vm0, %v1958_v48, 0.0 }
 0x693   : > { %1967 = vadd.xlane.f32.xlu1 %v1966_v25 }
 0x71b   : > { %v1965_v32 = vpop.xlane.xlu0 %1964 }
 0x71c   : > { %v1973_v40 = vmul.f32 0.015625, %v1965_v32  ;;  %v1962_v45 = vpop.xlane.xlu1 %1961 }
 0x71d   : > { %v1972_v3 = vmul.f32 0.015625, %v1962_v45 }
 0x71e   : > { %v1977_v36 = vsub.f32 %v1957_v2, %v1973_v40 }
 0x71f   : > { %v1976_v11 = vsub.f32 %v1956_v44, %v1972_v3  ;;  %v1971_v8 = vpop.xlane.xlu0 %1970 }
 0x720   : > { %v1975_v0 = vmul.f32 0.015625, %v1971_v8  ;;  %v1968_v16 = vpop.xlane.xlu1 %1967  ;;  %v1981_v20 = vmul.f32 %v1977_v36, %v1977_v36 }
 0x721   : > { %v1974_v24 = vmul.f32 0.015625, %v1968_v16  ;;  %v1980_v15 = vmul.f32 %v1976_v11, %v1976_v11 }
 0x722   : > { %v1979_v29 = vsub.f32 %v1959_v41, %v1975_v0  ;;  %v1987_v23 = vsel %vm582_vm0, %v1981_v20, 0.0 }
 0x723   : > { %v1978_v19 = vsub.f32 %v1958_v48, %v1974_v24  ;;  %1988 = vadd.xlane.f32.xlu0 %v1987_v23  ;;  %v1984_v60 = vsel %vm582_vm0, %v1980_v15, 0.0 }
 0x724   : > { %1985 = vadd.xlane.f32.xlu1 %v1984_v60  ;;  %v1983_v30 = vmul.f32 %v1979_v29, %v1979_v29 }
 0x725   : > { %v1982_v51 = vmul.f32 %v1978_v19, %v1978_v19 }
 0x726   : > { %v1993_v50 = vsel %vm582_vm0, %v1983_v30, 0.0 }
 0x727   : > { %1994 = vadd.xlane.f32.xlu0 %v1993_v50  ;;  %v1990_v12 = vsel %vm582_vm0, %v1982_v51, 0.0 }
 0x728   : > { %1991 = vadd.xlane.f32.xlu1 %v1990_v12 }
 0x7b0   : > { %v1989_v6 = vpop.xlane.xlu0 %1988 }
 0x7b1   : > { %v1997_v38 = vmul.f32 0.015625, %v1989_v6  ;;  %v1986_v42 = vpop.xlane.xlu1 %1985 }
 0x7b2   : > { %v1996_v63 = vmul.f32 0.015625, %v1986_v42 }
 0x7b3   : > { %v2001_v39 = vadd.f32 1e-05, %v1997_v38  ;;  %v2406_v38 = vld [vmem:[%s4020_s11] ss:$0 sm:$0xff] }
 0x7b4   : > { %v2000_v34 = vadd.f32 1e-05, %v1996_v63  ;;  %v1995_v61 = vpop.xlane.xlu0 %1994 }
 0x7b5   : > { %3026 = vrsqrt.f32 %v2001_v39  ;;  %v1999_v21 = vmul.f32 0.015625, %v1995_v61  ;;  %v1992_v37 = vpop.xlane.xlu1 %1991 }
 0x7b6   : > { %3028 = vrsqrt.f32 %v2000_v34  ;;  %v1998_v33 = vmul.f32 0.015625, %v1992_v37 }
 0x7b7   : > { %v2003_v54 = vadd.f32 1e-05, %v1999_v21 }
 0x7b8   : > { %v2002_v28 = vadd.f32 1e-05, %v1998_v33 }
 0x7ba   : > { %3030 = vrsqrt.f32 %v2002_v28  ;;  %v1509_v28 = vadd.f32 %v3862_v26, %v2406_v38 }
 0x7bb   : > { %3032 = vrsqrt.f32 %v2003_v54 }
 0x7bf   : > { %v3027_v43 = vpop.eup %3026 }
 0x7c0   : > { %v3029_v53 = vpop.eup %3028  ;;  %v2009_v1 = vmul.f32 %v3027_v43, %v1977_v36 }
 0x7c1   : > { %v2008_v13 = vmul.f32 %v3029_v53, %v1976_v11 }
 0x7c2   : > { %v2013_v44 = vmul.f32 %v3701_v14, %v2009_v1 }
 0x7c3   : > { %v2012_v2 = vmul.f32 %v3701_v14, %v2008_v13 }
 0x7c4   : > { %v3031_v9 = vpop.eup %3030  ;;  %v2017_v62 = vadd.f32 %v3708_v55, %v2013_v44  ;;  %v1514_v44 = vadd.f32 %v3864_v35, %v2406_v38 }
 0x7c5   : > { %v2016_v10 = vadd.f32 %v3708_v55, %v2012_v2  ;;  %v2010_v46 = vmul.f32 %v3031_v9, %v1978_v19  ;;  %v3033_v49 = vpop.eup %3032 }
 0x7c6   : > { %v2011_v22 = vmul.f32 %v3033_v49, %v1979_v29 }
 0x7c7   : > { %2421 = vmatmul.mubr.msk.f32.vlgmr.msra.gmra.mrb[36].mxu1 %vm582_vm0, %v2016_v10  ;;  %v2014_v17 = vmul.f32 %v3701_v14, %v2010_v46  ;;  %v1519_v46 = vadd.f32 %v3866_v56, %v2406_v38 }
 0x7c8   : > { %2102 = vmatprep.mubr.f32.mxu1 %v4033_v58  ;;  %v2015_v41 = vmul.f32 %v3701_v14, %v2011_v22  ;;  %v1524_v22 = vadd.f32 %v3868_v7, %v2406_v38 }
 0x7c9   : > { %v2018_v31 = vadd.f32 %v3708_v55, %v2014_v17 }
 0x7ca   : > { %v3900_v4 = vadd.f32 %v3708_v55, %v2015_v41 }
 0x7cb   : > { %2422 = vmatmul.mubr.msk.f32.gmra.mrb[38].mxu1 %vm582_vm0, %v2017_v62 }
 0x7cc   : > { %2108 = vmatprep.mubr.f32.mxu1 %v4033_v58 }
 0x7cf   : > { %2423 = vmatmul.mubr.msk.f32.gmra.mrb[40].mxu1 %vm582_vm0, %v2018_v31 }
 0x7d0   : > { %2114 = vmatprep.mubr.f32.mxu1 %v4033_v58 }
 0x7d3   : > { %2424 = vmatmul.mubr.msk.f32.gmra.mrb[42].mxu1 %vm582_vm0, %v3900_v4 }
 0x89a   : > { %v2098_v48 = vpop.f32.mrb[36].mxu1 }
 0x89b   : > { %v2099_v52 = vadd.f32 %v2098_v48, %v3813_v57  ;;  %v2100_v25 = vpop.f32.mrb[37].mxu1  ;;  %v1530_v48 = vadd.f32 %v1524_v22, %v3741_v5  ;;  %v2407_v22 = vld [vmem:[%s4021_s12] ss:$0 sm:$0xff] }
 0x89c   : > { %v2101_v32 = vadd.f32 %v2100_v25, %v3817_v27 }
 0x89d   : > { %v2121_v3 = vmax.f32 %v2099_v52, 0.0 }
 0x89e   : > { %v2122_v40 = vmax.f32 %v2101_v32, 0.0  ;;  %v2104_v45 = vpop.f32.mrb[38].mxu1 }
 0x89f   : > { %v2105_v14 = vadd.f32 %v2104_v45, %v3813_v57  ;;  %v2106_v36 = vpop.f32.mrb[39].mxu1 }
 0x8a0   : > { %v2107_v58 = vadd.f32 %v2106_v36, %v3817_v27  ;;  %2193 = vmatprep.mubr.f32.mxu0 %v2122_v40 }
 0x8a1   : > { %2194 = vmatmul.mubr.f32.vlgmr.msra.gmra.mrb[20].mxu0 %v2121_v3  ;;  %v2123_v8 = vmax.f32 %v2105_v14, 0.0 }
 0x8a2   : > { %v2124_v55 = vmax.f32 %v2107_v58, 0.0  ;;  %v2110_v11 = vpop.f32.mrb[40].mxu1 }
 0x8a3   : > { %v2111_v0 = vadd.f32 %v2110_v11, %v3813_v57  ;;  %v2112_v16 = vpop.f32.mrb[41].mxu1 }
 0x8a4   : > { %v2113_v20 = vadd.f32 %v2112_v16, %v3817_v27  ;;  %2198 = vmatprep.mubr.f32.mxu0 %v2124_v55 }
 0x8a5   : > { %2199 = vmatmul.mubr.f32.gmra.mrb[22].mxu0 %v2123_v8  ;;  %v2125_v29 = vmax.f32 %v2111_v0, 0.0 }
 0x8a6   : > { %v2126_v24 = vmax.f32 %v2113_v20, 0.0  ;;  %v2116_v15 = vpop.f32.mrb[42].mxu1 }
 0x8a7   : > { %v2117_v23 = vadd.f32 %v2116_v15, %v3813_v57  ;;  %v2118_v19 = vpop.f32.mrb[43].mxu1 }
 0x8a8   : > { %v2119_v60 = vadd.f32 %v2118_v19, %v3817_v27  ;;  %2203 = vmatprep.mubr.f32.mxu0 %v2126_v24 }
 0x8a9   : > { %2204 = vmatmul.mubr.f32.gmra.mrb[24].mxu0 %v2125_v29  ;;  %v2127_v51 = vmax.f32 %v2117_v23, 0.0 }
 0x8aa   : > { %v2128_v30 = vmax.f32 %v2119_v60, 0.0 }
 0x8ac   : > { %2208 = vmatprep.mubr.f32.mxu0 %v2128_v30 }
 0x8ad   : > { %2209 = vmatmul.mubr.f32.gmra.mrb[26].mxu0 %v2127_v51 }
 0x974   : > { %v2576_v50 = vpop.f32.mrb[20].mxu0 }
 0x975   : > { %v2577_v12 = vpop.f32.mrb[21].mxu0 }
 0x976   : > { %v2578_v6 = vadd.f32 %v2577_v12, %v2576_v50 }
 0x978   : > { %v2196_v42 = vadd.f32 %v2578_v6, %v2406_v38  ;;  %v2579_v63 = vpop.f32.mrb[22].mxu0 }
 0x979   : > { %v2580_v39 = vpop.f32.mrb[23].mxu0 }
 0x97a   : > { %v2581_v57 = vadd.f32 %v2580_v39, %v2579_v63  ;;  %v2214_v34 = vadd.f32 %v2196_v42, %v2016_v10  ;;  %v1527_v10 = vadd.f32 %v1509_v28, %v3712_v47  ;;  %v1529_v47 = vadd.f32 %v1519_v46, %v3731_v59 }
 0x97c   : > { %v2201_v61 = vadd.f32 %v2581_v57, %v2406_v38  ;;  %v2582_v27 = vpop.f32.mrb[24].mxu0  ;;  %v2218_v21 = vsel %vm582_vm0, %v2214_v34, 0.0  ;;  %v1539_v56 = vsel %vm582_vm0, %v1529_v47, 0.0 }
 0x97d   : > { %2219 = vadd.xlane.f32.xlu1 %v2218_v21  ;;  %v2583_v37 = vpop.f32.mrb[25].mxu0 }
 0x97e   : > { %v2584_v33 = vadd.f32 %v2583_v37, %v2582_v27  ;;  %v2215_v54 = vadd.f32 %v2201_v61, %v2017_v62  ;;  %v1533_v62 = vsel %vm582_vm0, %v1527_v10, 0.0 }
 0x980   : > { %v2206_v43 = vadd.f32 %v2584_v33, %v2406_v38  ;;  %v2585_v53 = vpop.f32.mrb[26].mxu0  ;;  %v2221_v13 = vsel %vm582_vm0, %v2215_v54, 0.0 }
 0x981   : > { %2222 = vadd.xlane.f32.xlu0 %v2221_v13  ;;  %v2586_v1 = vpop.f32.mrb[27].mxu0 }
 0x982   : > { %v2587_v2 = vadd.f32 %v2586_v1, %v2585_v53  ;;  %v2216_v9 = vadd.f32 %v2206_v43, %v2018_v31  ;;  %v1528_v31 = vadd.f32 %v1514_v44, %v3721_v18 }
 0x984   : > { %v2211_v49 = vadd.f32 %v2587_v2, %v2406_v38  ;;  %v2224_v17 = vsel %vm582_vm0, %v2216_v9, 0.0  ;;  %v1536_v35 = vsel %vm582_vm0, %v1528_v31, 0.0 }
 0x985   : > { %2225 = vadd.xlane.f32.xlu1 %v2224_v17 }
 0x986   : > { %v2217_v26 = vadd.f32 %v2211_v49, %v3900_v4  ;;  %v1542_v4 = vsel %vm582_vm0, %v1530_v48, 0.0 }
 0x988   : > { %v2227_v41 = vsel %vm582_vm0, %v2217_v26, 0.0 }
 0x989   : > { %2228 = vadd.xlane.f32.xlu0 %v2227_v41  ;;  %1534 = vadd.xlane.f32.xlu1 %v1533_v62 }
 0x98d   : > { %1537 = vadd.xlane.f32.xlu0 %v1536_v35  ;;  %1540 = vadd.xlane.f32.xlu1 %v1539_v56 }
 0x991   : > { %1543 = vadd.xlane.f32.xlu0 %v1542_v4 }
 0xa0a   : > { %v2220_v7 = vpop.xlane.xlu1 %2219 }
 0xa0b   : > { %v2230_v52 = vmul.f32 0.015625, %v2220_v7 }
 0xa0d   : > { %v3932_v25 = vsub.f32 %v2214_v34, %v2230_v52 }
 0xa0e   : > { %v2223_v18 = vpop.xlane.xlu0 %2222 }
 0xa0f   : > { %v2231_v32 = vmul.f32 0.015625, %v2223_v18  ;;  %v2238_v59 = vmul.f32 %v3932_v25, %v3932_v25 }
 0xa11   : > { %v3936_v40 = vsub.f32 %v2215_v54, %v2231_v32  ;;  %v2242_v45 = vsel %vm582_vm0, %v2238_v59, 0.0 }
 0xa12   : > { %2243 = vadd.xlane.f32.xlu1 %v2242_v45  ;;  %v2226_v5 = vpop.xlane.xlu1 %2225 }
 0xa13   : > { %v2232_v3 = vmul.f32 0.015625, %v2226_v5  ;;  %v2239_v14 = vmul.f32 %v3936_v40, %v3936_v40 }
 0xa15   : > { %v3941_v36 = vsub.f32 %v2216_v9, %v2232_v3  ;;  %v2245_v58 = vsel %vm582_vm0, %v2239_v14, 0.0 }
 0xa16   : > { %v2229_v55 = vpop.xlane.xlu0 %2228  ;;  %v1535_v11 = vpop.xlane.xlu1 %1534  ;;  %2246 = vadd.xlane.f32.xlu0 %v2245_v58 }
 0xa17   : > { %v2233_v8 = vmul.f32 0.015625, %v2229_v55  ;;  %v1545_v0 = vmul.f32 0.015625, %v1535_v11  ;;  %v2240_v16 = vmul.f32 %v3941_v36, %v3941_v36 }
 0xa19   : > { %v3946_v20 = vsub.f32 %v2217_v26, %v2233_v8  ;;  %v3948_v24 = vsub.f32 %v1527_v10, %v1545_v0  ;;  %v2248_v15 = vsel %vm582_vm0, %v2240_v16, 0.0 }
 0xa1a   : > { %v1538_v29 = vpop.xlane.xlu0 %1537  ;;  %2249 = vadd.xlane.f32.xlu1 %v2248_v15  ;;  %v1541_v23 = vpop.xlane.xlu1 %1540 }
 0xa1b   : > { %v1546_v19 = vmul.f32 0.015625, %v1538_v29  ;;  %v1547_v60 = vmul.f32 0.015625, %v1541_v23  ;;  %v1553_v30 = vmul.f32 %v3948_v24, %v3948_v24  ;;  %v2241_v51 = vmul.f32 %v3946_v20, %v3946_v20 }
 0xa1d   : > { %v3955_v50 = vsub.f32 %v1528_v31, %v1546_v19  ;;  %v3957_v12 = vsub.f32 %v1529_v47, %v1547_v60  ;;  %v1557_v6 = vsel %vm582_vm0, %v1553_v30, 0.0  ;;  %v2251_v38 = vsel %vm582_vm0, %v2241_v51, 0.0 }
 0xa1e   : > { %1558 = vadd.xlane.f32.xlu1 %v1557_v6  ;;  %2252 = vadd.xlane.f32.xlu0 %v2251_v38  ;;  %v1544_v42 = vpop.xlane.xlu0 %1543 }
 0xa1f   : > { %v1548_v63 = vmul.f32 0.015625, %v1544_v42  ;;  %v1555_v39 = vmul.f32 %v3957_v12, %v3957_v12  ;;  %v1554_v57 = vmul.f32 %v3955_v50, %v3955_v50 }
 0xa21   : > { %v3965_v34 = vsub.f32 %v1530_v48, %v1548_v63  ;;  %v1563_v61 = vsel %vm582_vm0, %v1555_v39, 0.0  ;;  %v1560_v27 = vsel %vm582_vm0, %v1554_v57, 0.0  ;;  %v2408_v48 = vld [vmem:[%s4022_s13] ss:$0 sm:$0xff] }
 0xa22   : > { %1564 = vadd.xlane.f32.xlu1 %v1563_v61  ;;  %1561 = vadd.xlane.f32.xlu0 %v1560_v27 }
 0xa23   : > { %v1556_v21 = vmul.f32 %v3965_v34, %v3965_v34 }
 0xa25   : > { %v1566_v37 = vsel %vm582_vm0, %v1556_v21, 0.0 }
 0xa26   : > { %1567 = vadd.xlane.f32.xlu0 %v1566_v37 }
 0xa9f   : > { %v2244_v33 = vpop.xlane.xlu1 %2243 }
 0xaa0   : > { %v2254_v54 = vmul.f32 0.015625, %v2244_v33 }
 0xaa2   : > { %v2258_v28 = vadd.f32 1e-05, %v2254_v54 }
 0xaa3   : > { %v2247_v43 = vpop.xlane.xlu0 %2246 }
 0xaa4   : > { %3034 = vrsqrt.f32 %v2258_v28  ;;  %v2255_v53 = vmul.f32 0.015625, %v2247_v43 }
 0xaa6   : > { %v2259_v13 = vadd.f32 1e-05, %v2255_v53 }
 0xaa7   : > { %v2250_v1 = vpop.xlane.xlu1 %2249 }
 0xaa8   : > { %3036 = vrsqrt.f32 %v2259_v13  ;;  %v2256_v2 = vmul.f32 0.015625, %v2250_v1 }
 0xaaa   : > { %v2260_v9 = vadd.f32 1e-05, %v2256_v2 }
 0xaab   : > { %v1559_v10 = vpop.xlane.xlu1 %1558  ;;  %v2253_v44 = vpop.xlane.xlu0 %2252 }
 0xaac   : > { %3038 = vrsqrt.f32 %v2260_v9  ;;  %v1569_v46 = vmul.f32 0.015625, %v1559_v10  ;;  %v2257_v49 = vmul.f32 0.015625, %v2253_v44 }
 0xaae   : > { %v3035_v17 = vpop.eup %3034  ;;  %v1573_v26 = vadd.f32 1e-05, %v1569_v46  ;;  %v2261_v62 = vadd.f32 1e-05, %v2257_v49 }
 0xaaf   : > { %v1565_v41 = vpop.xlane.xlu1 %1564  ;;  %v1562_v31 = vpop.xlane.xlu0 %1561  ;;  %v2266_v47 = vmul.f32 %v3035_v17, %v3932_v25 }
 0xab0   : > { %3040 = vrsqrt.f32 %v1573_v26  ;;  %v1571_v35 = vmul.f32 0.015625, %v1565_v41  ;;  %v1570_v56 = vmul.f32 0.015625, %v1562_v31 }
 0xab1   : > { %3042 = vrsqrt.f32 %v2261_v62  ;;  %v2270_v4 = vmul.f32 %v2407_v22, %v2266_v47 }
 0xab2   : > { %v3037_v7 = vpop.eup %3036  ;;  %v1575_v52 = vadd.f32 1e-05, %v1571_v35  ;;  %v1574_v18 = vadd.f32 1e-05, %v1570_v56 }
 0xab3   : > { %v1568_v32 = vpop.xlane.xlu0 %1567  ;;  %v2274_v59 = vadd.f32 %v2408_v48, %v2270_v4  ;;  %v2267_v45 = vmul.f32 %v3037_v7, %v3936_v40 }
 0xab4   : > { %3044 = vrsqrt.f32 %v1575_v52  ;;  %v1572_v5 = vmul.f32 0.015625, %v1568_v32 }
 0xab5   : > { %3046 = vrsqrt.f32 %v1574_v18  ;;  %2282 = vrot.lane.b32.xlu1 %v2274_v59, %s3079_s25  ;;  %v2271_v25 = vmul.f32 %v2407_v22, %v2267_v45 }
 0xab6   : > { %v3039_v3 = vpop.eup %3038  ;;  %v1576_v14 = vadd.f32 1e-05, %v1572_v5 }
 0xab7   : > { %v2275_v58 = vadd.f32 %v2408_v48, %v2271_v25  ;;  %v2268_v55 = vmul.f32 %v3039_v3, %v3941_v36 }
 0xab8   : > { %3048 = vrsqrt.f32 %v1576_v14 }
 0xab9   : > { %2284 = vrot.lane.b32.xlu0 %v2275_v58, %s3079_s25  ;;  %v2272_v11 = vmul.f32 %v2407_v22, %v2268_v55 }
 0xaba   : > { %v3041_v8 = vpop.eup %3040 }
 0xabb   : > { %v3043_v0 = vpop.eup %3042  ;;  %v2276_v16 = vadd.f32 %v2408_v48, %v2272_v11  ;;  %v1581_v40 = vmul.f32 %v3041_v8, %v3948_v24 }
 0xabc   : > { %v2269_v15 = vmul.f32 %v3043_v0, %v3946_v20 }
 0xabd   : > { %2286 = vrot.lane.b32.xlu1 %v2276_v16, %s3079_s25  ;;  %v1591_v29 = vmul.f32 %v2407_v22, %v1581_v40 }
 0xabe   : > { %v3045_v23 = vpop.eup %3044  ;;  %v2273_v19 = vmul.f32 %v2407_v22, %v2269_v15 }
 0xabf   : > { %v3047_v60 = vpop.eup %3046  ;;  %v1601_v30 = vadd.f32 %v2408_v48, %v1591_v29  ;;  %v1583_v36 = vmul.f32 %v3045_v23, %v3957_v12 }
 0xac0   : > { %v2277_v51 = vadd.f32 %v2408_v48, %v2273_v19  ;;  %v1582_v6 = vmul.f32 %v3047_v60, %v3955_v50 }
 0xac1   : > { %v1593_v38 = vmul.f32 %v2407_v22, %v1583_v36 }
 0xac2   : > { %v3049_v42 = vpop.eup %3048  ;;  %2288 = vrot.lane.b32.xlu1 %v2277_v51, %s3079_s25  ;;  %v1592_v24 = vmul.f32 %v2407_v22, %v1582_v6 }
 0xac3   : > { %v1603_v63 = vadd.f32 %v2408_v48, %v1593_v38  ;;  %v1584_v20 = vmul.f32 %v3049_v42, %v3965_v34 }
 0xac4   : > { %v1602_v39 = vadd.f32 %v2408_v48, %v1592_v24 }
 0xac5   : > { %v1594_v57 = vmul.f32 %v2407_v22, %v1584_v20 }
 0xac7   : > { %v1604_v61 = vadd.f32 %v2408_v48, %v1594_v57 }
 0xb27   : > { %v2283_v50 = vpop.permute.xlu1 %2282 }
 0xb28   : > { %v2294_v12 = vsel %vm582_vm0, %v1601_v30, %v2283_v50 }
 0xb29   : > { %2298 = vst [vmem:[%s531_s18] sm:$0xff] %v2294_v12 }
 0xb2b   : > { %v2285_v27 = vpop.permute.xlu0 %2284 }
 0xb2c   : > { %v2295_v21 = vsel %vm582_vm0, %v1602_v39, %v2285_v27 }
 0xb2d   : > { %2299 = vst [vmem:[%s531_s18 + $0x8] sm:$0xff] %v2295_v21 }
 0xb2f   : > { %v2287_v34 = vpop.permute.xlu1 %2286 }
 0xb30   : > { %v2296_v37 = vsel %vm582_vm0, %v1603_v63, %v2287_v34 }
 0xb31   : > { %2300 = vst [vmem:[%s531_s18 + $0x10] sm:$0xff] %v2296_v37 }
 0xb34   : > { %v2289_v33 = vpop.permute.xlu1 %2288 }
 0xb35   : > { %v2297_v54 = vsel %vm582_vm0, %v1604_v61, %v2289_v33 }
 0xb36   : > { %2301 = vst [vmem:[%s531_s18 + $0x18] sm:$0xff] %v2297_v54 }
 0xb37 PF: > { %p21_p9 = scmp.ge.s32.totalorder %s3172_s17, 4   ;;  %s4039_s29 = smov %s3072_s30 }
 0xb38   : > { %s4040_s30 = smov %s3181_s20  ;;  %s4041_s15 = smov %s3172_s17 }
 0xb39   :  { %23 = sbr.rel (!%p21_p9) target bundleno = 2 (0x2), region = 150 }

</bundles_post_ra>
